<compile_context>
chip_gen: v7x
topology: tpu7x:2x2x1
jax: 0.10.0
libtpu: 0.0.40
codegen_flags: <defaults>
</compile_context>

<pallas_src>
import functools

import numpy as np
import jax
import jax.numpy as jnp
from jax import lax
from jax.experimental import pallas as pl
from jax.experimental.pallas import tpu as pltpu


def enc_kernel(x_ref, wc_ref, b1_ref, cw_ref, cwsq_ref, scale_ref,
               ax_ref, asum_ref, *, n_valid, tile_cols, split_cols, needs_mask):
    """Accumulate the Encoding aggregation over pixel tiles.

    Grid = (split, batch, pixel_tile).  The pixel-tile axis is a reduction
    axis: the (K, D) / (K, 1) output blocks are VMEM-resident across it and
    act as accumulators (zero-init at tile 0).
    """
    split = pl.program_id(0)
    j = pl.program_id(2)

    @pl.when(j == 0)
    def _init():
        ax_ref[...] = jnp.zeros_like(ax_ref)
        asum_ref[...] = jnp.zeros_like(asum_ref)

    x = x_ref[...]                                                     # (D, tn) f32

    # ---- 1x1 conv (BN2d scale folded into the bf16 weight) + shift + ReLU ----
    # bf16 MXU operands, f32 accumulation; elementwise math stays f32.
    x1 = jnp.dot(wc_ref[...], x.astype(jnp.bfloat16),
                 preferred_element_type=jnp.float32)                   # (D, tn)
    x1 = jnp.maximum(x1 + b1_ref[...], 0.0)
    x1b = x1.astype(jnp.bfloat16)

    # ---- Encoding: scaled L2 distance + softmax over the K codewords ----
    xc = jnp.dot(cw_ref[...], x1b, preferred_element_type=jnp.float32)  # (K, tn)
    x_sq = jnp.sum(x1 * x1, axis=0, keepdims=True)                      # (1, tn) f32
    sl = scale_ref[...] * (x_sq - 2.0 * xc + cwsq_ref[...])             # (K, tn)
    sl = sl - jnp.max(sl, axis=0, keepdims=True)
    e = jnp.exp(sl)
    # approx reciprocal -> EUP slot, frees VALU bundles in the softmax phase.
    A = e * pl.reciprocal(jnp.sum(e, axis=0, keepdims=True), approx=True)

    if needs_mask:
        # N was padded up to a tile multiple: zero the softmax weights of the
        # padded pixel lanes so they do not contribute to the aggregation.
        col0 = split * split_cols + j * tile_cols
        cols = col0 + lax.broadcasted_iota(jnp.int32, A.shape, 1)
        A = jnp.where(cols < n_valid, A, 0.0)

    # ---- Partial aggregation for this pixel tile (contract over N) ----
    #   ax[k, d]  += sum_n A[k, n] * x1[d, n]
    #   asum[k]   += sum_n A[k, n]
    ax_ref[...] += lax.dot_general(
        A.astype(jnp.bfloat16), x1b,
        dimension_numbers=(((1,), (1,)), ((), ())),
        preferred_element_type=jnp.float32)                            # (K, D) f32
    asum_ref[...] += jnp.sum(A, axis=1, keepdims=True)                 # (K, 1) f32


def _pallas_encode(x_pad, wc, b1, cw, cwsq, scale, *, D, K, tn, ntps, n_splits,
                   B, n_valid, needs_mask, use_buffered_weights, vmem_limit):
    kernel = functools.partial(
        enc_kernel, n_valid=n_valid, tile_cols=tn, split_cols=ntps * tn,
        needs_mask=needs_mask)

    def const2(s_, b_, j_):
        return (0, 0)

    def wspec(shape):
        # Constant blocks do not need double buffers; single-buffering them
        # frees VMEM for a larger pixel tile (matters most on v7x's 64 MiB).
        if use_buffered_weights:
            return pl.BlockSpec(shape, const2, pipeline_mode=pl.Buffered(1))
        return pl.BlockSpec(shape, const2)

    return pl.pallas_call(
        kernel,
        out_shape=[
            jax.ShapeDtypeStruct((n_splits, B, K, D), jnp.float32),    # Sum_n A*x1
            jax.ShapeDtypeStruct((n_splits, B, K, 1), jnp.float32),    # Sum_n A
        ],
        grid_spec=pltpu.PrefetchScalarGridSpec(
            num_scalar_prefetch=0,
            grid=(n_splits, B, ntps),
            in_specs=[
                # x tile: kernel sees a clean (D, tn) ref.
                # (On v6e, once HBM-bound, sweep pipeline_mode=pl.Buffered(3) here.)
                pl.BlockSpec((pl.Squeezed(), D, tn),
                             lambda s_, b_, j_: (b_, 0, s_ * ntps + j_)),
                wspec((D, D)),        # conv weight, bf16, BN2d scale folded
                wspec((D, 1)),        # BN2d folded shift, f32
                wspec((K, D)),        # codewords, bf16
                wspec((K, 1)),        # ||codeword||^2, f32
                wspec((K, 1)),        # encoding scale, f32
            ],
            out_specs=[
                pl.BlockSpec((pl.Squeezed(), pl.Squeezed(), K, D),
                             lambda s_, b_, j_: (s_, b_, 0, 0)),
                pl.BlockSpec((pl.Squeezed(), pl.Squeezed(), K, 1),
                             lambda s_, b_, j_: (s_, b_, 0, 0)),
            ],
        ),
        compiler_params=pltpu.CompilerParams(
            # split & batch parallel (megacore / v7x 2-TC), N-tile is a reduction.
            dimension_semantics=("parallel", "parallel", "arbitrary"),
            vmem_limit_bytes=vmem_limit,
        ),
    )(x_pad, wc, b1, cw, cwsq, scale)


def enc_module_forward(x_nchw, p, *, tile_n=512, n_splits=1):
    """EncModule forward.  `n_splits=2` splits the N reduction across v7x's
    two TensorCores (useful at batch 1-2); keep 1 on v5e/v6e."""
    B, C, H, W = x_nchw.shape
    D = C
    N = H * W
    K = p["codewords"].shape[0]

    assert tile_n % 128 == 0, "tile_n must be a multiple of 128 lanes"

    # Channels-first flat layout (B, D, N): a pure reshape of NCHW.
    x = x_nchw.reshape(B, D, N).astype(jnp.float32)

    # Pixel tile (lane axis): multiple of 128, no wider than the padded N.
    tn = min(tile_n, ((N + 127) // 128) * 128)
    nt = -(-N // tn)                                # number of pixel tiles
    nt = -(-nt // n_splits) * n_splits              # divisible by n_splits
    ntps = nt // n_splits                           # tiles per split
    N_pad = nt * tn
    needs_mask = N_pad != N
    if needs_mask:
        x = jnp.pad(x, ((0, 0), (0, 0), (0, N_pad - N)))

    # Pre-fold / pre-transpose / pre-cast weights once (no in-kernel XLU work,
    # bf16 MXU operands with f32 side constants).
    cw_f32 = p["codewords"].astype(jnp.float32)                        # (K, D)
    wc_bf16 = (p["a1"][:, None] * p["w_conv"]).astype(jnp.bfloat16)    # (D, D)
    b1 = p["b1"][:, None].astype(jnp.float32)                          # (D, 1)
    cw_bf16 = cw_f32.astype(jnp.bfloat16)                              # (K, D)
    cw_sq = jnp.sum(cw_f32 * cw_f32, axis=-1, keepdims=True)           # (K, 1) f32
    scale = p["scale"][:, None].astype(jnp.float32)                    # (K, 1)

    # VMEM budget: dominated by the pipelined (D, tn) x tile + bf16 weights.
    # Cap at 48 MiB so the tiling also fits v7x's 64 MiB physical VMEM
    # (raise toward 64-100 MiB on v5e/v6e when sweeping larger tiles).
    vmem_limit = int(min(48 * 2**20, max(32 * 2**20, 8 * D * tn * 4)))

    common = dict(D=D, K=K, tn=tn, ntps=ntps, n_splits=n_splits, B=B,
                  n_valid=N, needs_mask=needs_mask, vmem_limit=vmem_limit)
    try:
        acc_ax, acc_as = _pallas_encode(
            x, wc_bf16, b1, cw_bf16, cw_sq, scale,
            use_buffered_weights=True, **common)
    except Exception:
        # Fallback if this JAX build rejects pipeline_mode=pl.Buffered(1)
        # on constant-index BlockSpecs; correctness is unaffected.
        acc_ax, acc_as = _pallas_encode(
            x, wc_bf16, b1, cw_bf16, cw_sq, scale,
            use_buffered_weights=False, **common)

    # ---- Tiny XLA epilogue (fuses; keeps fc/se weights out of kernel VMEM) ----
    ax = jnp.sum(acc_ax, axis=0)                                       # (B, K, D)
    an = jnp.sum(acc_as, axis=0)                                       # (B, K, 1)
    E = ax - an * cw_f32[None]                                         # (B, K, D)
    E = jnp.maximum(E * p["a2"][None, :, None] + p["b2"][None, :, None], 0.0)
    en = jnp.mean(E, axis=1)                                           # (B, D)
    gamma = jax.nn.sigmoid(en @ p["w_fc"].T + p["b_fc"])               # (B, D)
    se = en @ p["w_se"].T + p["b_se"]                                  # (B, nclass)

    # relu(x + x*gamma) == (1 + gamma) * relu(x)   since 1 + sigmoid > 0.
    out0 = jnp.maximum(x_nchw, 0.0) * (1.0 + gamma)[:, :, None, None]
    return out0, se


def ref_forward(x_nchw, p):
    """Pure-JAX f32 reference mirroring the PyTorch forward (eval-mode BN)."""
    B, C, H, W = x_nchw.shape
    x1 = jnp.einsum("bchw,oc->bohw", x_nchw, p["w_conv"])
    x1 = x1 * p["a1"][None, :, None, None] + p["b1"][None, :, None, None]
    x1 = jnp.maximum(x1, 0.0)
    X = x1.reshape(B, C, H * W).transpose(0, 2, 1)                 # (B, N, D)
    Cw, s = p["codewords"], p["scale"]
    diff = X[:, :, None, :] - Cw[None, None, :, :]                 # (B, N, K, D)
    sl = s[None, None, :] * jnp.sum(diff * diff, axis=-1)          # (B, N, K)
    A = jax.nn.softmax(sl, axis=2)
    E = jnp.sum(A[..., None] * diff, axis=1)                       # (B, K, D)
    E = jnp.maximum(E * p["a2"][None, :, None] + p["b2"][None, :, None], 0.0)
    en = jnp.mean(E, axis=1)                                       # (B, D)
    gamma = 1.0 / (1.0 + jnp.exp(-(en @ p["w_fc"].T + p["b_fc"])))
    y = gamma[:, :, None, None]
    out0 = jnp.maximum(x_nchw + x_nchw * y, 0.0)
    se = en @ p["w_se"].T + p["b_se"]
    return out0, se


def make_params(key, in_channels, nclass, ncodes):
    D, K = in_channels, ncodes
    ks = jax.random.split(key, 12)
    std_cw = 1.0 / ((K * D) ** 0.5)
    eps = 1e-5

    # BatchNorm2d(D) eval-mode params -> folded affine a1, b1.
    g1 = jax.random.uniform(ks[0], (D,), minval=0.5, maxval=1.5)
    be1 = jax.random.normal(ks[1], (D,)) * 0.1
    m1 = jax.random.normal(ks[2], (D,)) * 0.1
    v1 = jax.random.uniform(ks[3], (D,), minval=0.5, maxval=1.5)
    a1 = g1 / jnp.sqrt(v1 + eps)
    b1 = be1 - m1 * a1

    # BatchNorm1d(K) eval-mode params -> folded affine a2, b2.
    g2 = jax.random.uniform(ks[4], (K,), minval=0.5, maxval=1.5)
    be2 = jax.random.normal(ks[5], (K,)) * 0.1
    m2 = jax.random.normal(ks[6], (K,)) * 0.1
    v2 = jax.random.uniform(ks[7], (K,), minval=0.5, maxval=1.5)
    a2 = g2 / jnp.sqrt(v2 + eps)
    b2 = be2 - m2 * a2

    return dict(
        w_conv=jax.random.normal(ks[8], (D, D)) * 0.2,             # Conv2d(D, D, 1, bias=False)
        a1=a1, b1=b1,
        codewords=jax.random.uniform(ks[9], (K, D), minval=-std_cw, maxval=std_cw),
        scale=jax.random.uniform(ks[10], (K,), minval=-1.0, maxval=0.0),
        a2=a2, b2=b2,
        w_fc=jax.random.normal(ks[11], (D, D)) * 0.2,              # Linear(D, D)
        b_fc=jnp.linspace(-0.1, 0.1, D).astype(jnp.float32),
        w_se=jax.random.normal(jax.random.PRNGKey(123), (nclass, D)) * 0.2,  # Linear(D, nclass)
        b_se=jnp.linspace(-0.05, 0.05, nclass).astype(jnp.float32),
    )
    # TODO(synk): training-mode BatchNorm (batch statistics) is not implemented;
    # eval-mode running-stat BN is folded into affine scale/shift instead.


if __name__ == "__main__":
    # N = 400 is NOT a multiple of 128 -> exercises the pad + lane-mask path.
    B, C, H, W = 2, 16, 20, 20
    ncodes, nclass = 32, 4

    key = jax.random.PRNGKey(0)
    kx, kp = jax.random.split(key)
    x = jax.random.normal(kx, (B, C, H, W), dtype=jnp.float32)
    params = make_params(kp, in_channels=C, nclass=nclass, ncodes=ncodes)
    params = jax.tree_util.tree_map(lambda a: a.astype(jnp.float32), params)

    ref0, ref_se = ref_forward(x, params)

    # bf16 MXU operands (f32 accumulation) -> slightly looser tolerance than
    # a pure-f32 kernel would need.
    RTOL = ATOL = 2e-2

    # Default config: single (padded, masked) pixel tile per image.
    out0, se_out = enc_module_forward(x, params)
    jax.block_until_ready((out0, se_out))
    np.testing.assert_allclose(np.asarray(out0), np.asarray(ref0), rtol=RTOL, atol=ATOL)
    np.testing.assert_allclose(np.asarray(se_out), np.asarray(ref_se), rtol=RTOL, atol=ATOL)

    # Multi-tile accumulation + 2-way split of the N reduction
    # (the v7x small-batch two-TensorCore path).
    out0b, se_outb = enc_module_forward(x, params, tile_n=128, n_splits=2)
    jax.block_until_ready((out0b, se_outb))
    np.testing.assert_allclose(np.asarray(out0b), np.asarray(ref0), rtol=RTOL, atol=ATOL)
    np.testing.assert_allclose(np.asarray(se_outb), np.asarray(ref_se), rtol=RTOL, atol=ATOL)

    print("KERNEL_OK")
</pallas_src>

<mosaic_0001>
module attributes {stable_mosaic.version = 11 : i64} {
  func.func @enc_kernel(%arg0: i32, %arg1: i32, %arg2: i32, %arg3: memref<1x16x512xf32, #tpu.memory_space<vmem>>, %arg4: memref<16x16xbf16, #tpu.memory_space<vmem>>, %arg5: memref<16x1xf32, #tpu.memory_space<vmem>>, %arg6: memref<32x16xbf16, #tpu.memory_space<vmem>>, %arg7: memref<32x1xf32, #tpu.memory_space<vmem>>, %arg8: memref<32x1xf32, #tpu.memory_space<vmem>>, %arg9: memref<1x1x32x16xf32, #tpu.memory_space<vmem>>, %arg10: memref<1x1x32x1xf32, #tpu.memory_space<vmem>>) attributes {dimension_semantics = [#tpu.dimension_semantics<parallel>, #tpu.dimension_semantics<parallel>, #tpu.dimension_semantics<arbitrary>], iteration_bounds = array<i64: 1, 2, 1>, scalar_prefetch = 0 : i64, scratch_operands = 0 : i64, tpu.core_type = #tpu.core_type<tc>, window_params = [{transform_indices = @transform_0, window_bounds = array<i64: 1, 16, 512>}, {pipeline_mode = #tpu.pipeline_mode<synchronous>, transform_indices = @transform_1, window_bounds = array<i64: 16, 16>}, {pipeline_mode = #tpu.pipeline_mode<synchronous>, transform_indices = @transform_2, window_bounds = array<i64: 16, 1>}, {pipeline_mode = #tpu.pipeline_mode<synchronous>, transform_indices = @transform_3, window_bounds = array<i64: 32, 16>}, {pipeline_mode = #tpu.pipeline_mode<synchronous>, transform_indices = @transform_4, window_bounds = array<i64: 32, 1>}, {pipeline_mode = #tpu.pipeline_mode<synchronous>, transform_indices = @transform_5, window_bounds = array<i64: 32, 1>}, {transform_indices = @transform_6, window_bounds = array<i64: 1, 1, 32, 16>}, {transform_indices = @transform_7, window_bounds = array<i64: 1, 1, 32, 1>}]} {
    %c0_i32 = arith.constant 0 : i32
    %0 = arith.cmpi eq, %arg2, %c0_i32 : i32
    %1 = arith.extui %0 : i1 to i32
    %c0_i32_0 = arith.constant 0 : i32
    %2 = arith.cmpi ne, %1, %c0_i32_0 : i32
    scf.if %2 {
      %cst_39 = arith.constant 0.000000e+00 : f32
      %65 = vector.broadcast %cst_39 : f32 to vector<32x16xf32>
      %c0_40 = arith.constant 0 : index
      %c0_41 = arith.constant 0 : index
      %c0_42 = arith.constant 0 : index
      %c0_43 = arith.constant 0 : index
      %66 = vector.load %arg9[%c0_40, %c0_41, %c0_42, %c0_43] : memref<1x1x32x16xf32, #tpu.memory_space<vmem>>, vector<1x1x32x16xf32>
      %67 = vector.shape_cast %66 : vector<1x1x32x16xf32> to vector<32x16xf32>
      %68 = vector.shape_cast %65 : vector<32x16xf32> to vector<1x1x32x16xf32>
      tpu.vector_store %arg9[%c0_40, %c0_41, %c0_42, %c0_43], %68 {strides = array<i32>} : memref<1x1x32x16xf32, #tpu.memory_space<vmem>>, vector<1x1x32x16xf32>,
      %cst_44 = arith.constant 0.000000e+00 : f32
      %69 = vector.broadcast %cst_44 : f32 to vector<32x1xf32>
      %c0_45 = arith.constant 0 : index
      %c0_46 = arith.constant 0 : index
      %c0_47 = arith.constant 0 : index
      %c0_48 = arith.constant 0 : index
      %70 = vector.load %arg10[%c0_45, %c0_46, %c0_47, %c0_48] : memref<1x1x32x1xf32, #tpu.memory_space<vmem>>, vector<1x1x32x1xf32>
      %71 = vector.shape_cast %70 : vector<1x1x32x1xf32> to vector<32x1xf32>
      %72 = vector.shape_cast %69 : vector<32x1xf32> to vector<1x1x32x1xf32>
      tpu.vector_store %arg10[%c0_45, %c0_46, %c0_47, %c0_48], %72 {strides = array<i32>} : memref<1x1x32x1xf32, #tpu.memory_space<vmem>>, vector<1x1x32x1xf32>,
    } else {
    }
    %c0 = arith.constant 0 : index
    %c0_1 = arith.constant 0 : index
    %c0_2 = arith.constant 0 : index
    %3 = vector.load %arg3[%c0, %c0_1, %c0_2] : memref<1x16x512xf32, #tpu.memory_space<vmem>>, vector<1x16x512xf32>
    %4 = vector.shape_cast %3 : vector<1x16x512xf32> to vector<16x512xf32>
    %c0_3 = arith.constant 0 : index
    %c0_4 = arith.constant 0 : index
    %5 = vector.load %arg4[%c0_3, %c0_4] : memref<16x16xbf16, #tpu.memory_space<vmem>>, vector<16x16xbf16>
    %6 = arith.truncf %4 : vector<16x512xf32> to vector<16x512xbf16>
    %cst = arith.constant dense<0.000000e+00> : vector<16x512xf32>
    %7 = tpu.matmul %5, %6, %cst {dimension_numbers = #tpu.dot_dimension_numbers<[1], [0], [0], [1], [0, 0, 1, 1], [], []>} : vector<16x16xbf16>, vector<16x512xbf16>, vector<16x512xf32> -> vector<16x512xf32>
    %c0_5 = arith.constant 0 : index
    %c0_6 = arith.constant 0 : index
    %8 = vector.load %arg5[%c0_5, %c0_6] : memref<16x1xf32, #tpu.memory_space<vmem>>, vector<16x1xf32>
    %9 = vector.broadcast %8 : vector<16x1xf32> to vector<16x512xf32>
    %10 = arith.addf %7, %9 : vector<16x512xf32>
    %cst_7 = arith.constant 0.000000e+00 : f32
    %11 = vector.broadcast %cst_7 : f32 to vector<16x512xf32>
    %12 = arith.maximumf %10, %11 : vector<16x512xf32>
    %13 = arith.truncf %12 : vector<16x512xf32> to vector<16x512xbf16>
    %c0_8 = arith.constant 0 : index
    %c0_9 = arith.constant 0 : index
    %14 = vector.load %arg6[%c0_8, %c0_9] : memref<32x16xbf16, #tpu.memory_space<vmem>>, vector<32x16xbf16>
    %cst_10 = arith.constant dense<0.000000e+00> : vector<32x512xf32>
    %15 = tpu.matmul %14, %13, %cst_10 {dimension_numbers = #tpu.dot_dimension_numbers<[1], [0], [0], [1], [0, 0, 1, 1], [], []>} : vector<32x16xbf16>, vector<16x512xbf16>, vector<32x512xf32> -> vector<32x512xf32>
    %16 = arith.mulf %12, %12 : vector<16x512xf32>
    %cst_11 = arith.constant dense<0.000000e+00> : vector<512xf32>
    %17 = vector.multi_reduction <add>, %16, %cst_11 [0] : vector<16x512xf32> to vector<512xf32>
    %18 = vector.shape_cast %17 : vector<512xf32> to vector<1x512xf32>
    %c0_12 = arith.constant 0 : index
    %c0_13 = arith.constant 0 : index
    %19 = vector.load %arg8[%c0_12, %c0_13] : memref<32x1xf32, #tpu.memory_space<vmem>>, vector<32x1xf32>
    %cst_14 = arith.constant 2.000000e+00 : f32
    %20 = vector.broadcast %cst_14 : f32 to vector<32x512xf32>
    %21 = arith.mulf %20, %15 : vector<32x512xf32>
    %22 = vector.broadcast %18 : vector<1x512xf32> to vector<32x512xf32>
    %23 = arith.subf %22, %21 : vector<32x512xf32>
    %c0_15 = arith.constant 0 : index
    %c0_16 = arith.constant 0 : index
    %24 = vector.load %arg7[%c0_15, %c0_16] : memref<32x1xf32, #tpu.memory_space<vmem>>, vector<32x1xf32>
    %25 = vector.broadcast %24 : vector<32x1xf32> to vector<32x512xf32>
    %26 = arith.addf %23, %25 : vector<32x512xf32>
    %27 = vector.broadcast %19 : vector<32x1xf32> to vector<32x512xf32>
    %28 = arith.mulf %27, %26 : vector<32x512xf32>
    %cst_17 = arith.constant dense<0xFF800000> : vector<512xf32>
    %29 = vector.multi_reduction <maximumf>, %28, %cst_17 [0] : vector<32x512xf32> to vector<512xf32>
    %30 = vector.shape_cast %29 : vector<512xf32> to vector<1x512xf32>
    %31 = vector.broadcast %30 : vector<1x512xf32> to vector<32x512xf32>
    %32 = arith.subf %28, %31 : vector<32x512xf32>
    %33 = math.exp %32 : vector<32x512xf32>
    %cst_18 = arith.constant dense<0.000000e+00> : vector<512xf32>
    %34 = vector.multi_reduction <add>, %33, %cst_18 [0] : vector<32x512xf32> to vector<512xf32>
    %35 = vector.shape_cast %34 : vector<512xf32> to vector<1x512xf32>
    %36 = tpu.reciprocal %35 {approx = true} : vector<1x512xf32> -> vector<1x512xf32>
    %37 = vector.broadcast %36 : vector<1x512xf32> to vector<32x512xf32>
    %38 = arith.mulf %33, %37 : vector<32x512xf32>
    %c512_i32 = arith.constant 512 : i32
    %39 = arith.muli %arg0, %c512_i32 : i32
    %c512_i32_19 = arith.constant 512 : i32
    %40 = arith.muli %arg2, %c512_i32_19 : i32
    %41 = arith.addi %39, %40 : i32
    %42 = tpu.iota {dimensions = array<i32: 1>} : vector<32x512xi32>
    %43 = vector.broadcast %41 : i32 to vector<32x512xi32>
    %44 = arith.addi %43, %42 : vector<32x512xi32>
    %c400_i32 = arith.constant 400 : i32
    %45 = vector.broadcast %c400_i32 : i32 to vector<32x512xi32>
    %46 = arith.cmpi slt, %44, %45 : vector<32x512xi32>
    %cst_20 = arith.constant 0.000000e+00 : f32
    %47 = vector.broadcast %cst_20 : f32 to vector<32x512xf32>
    %48 = arith.select %46, %38, %47 : vector<32x512xi1>, vector<32x512xf32>
    %c0_21 = arith.constant 0 : index
    %c0_22 = arith.constant 0 : index
    %c0_23 = arith.constant 0 : index
    %c0_24 = arith.constant 0 : index
    %49 = vector.load %arg9[%c0_21, %c0_22, %c0_23, %c0_24] : memref<1x1x32x16xf32, #tpu.memory_space<vmem>>, vector<1x1x32x16xf32>
    %50 = vector.shape_cast %49 : vector<1x1x32x16xf32> to vector<32x16xf32>
    %51 = arith.truncf %48 : vector<32x512xf32> to vector<32x512xbf16>
    %cst_25 = arith.constant dense<0.000000e+00> : vector<32x16xf32>
    %52 = tpu.matmul %51, %13, %cst_25 {dimension_numbers = #tpu.dot_dimension_numbers<[1], [1], [0], [0], [0, 0, 1, 0], [], []>} : vector<32x512xbf16>, vector<16x512xbf16>, vector<32x16xf32> -> vector<32x16xf32>
    %53 = arith.addf %50, %52 : vector<32x16xf32>
    %c0_26 = arith.constant 0 : index
    %c0_27 = arith.constant 0 : index
    %c0_28 = arith.constant 0 : index
    %c0_29 = arith.constant 0 : index
    %54 = vector.load %arg9[%c0_26, %c0_27, %c0_28, %c0_29] : memref<1x1x32x16xf32, #tpu.memory_space<vmem>>, vector<1x1x32x16xf32>
    %55 = vector.shape_cast %54 : vector<1x1x32x16xf32> to vector<32x16xf32>
    %56 = vector.shape_cast %53 : vector<32x16xf32> to vector<1x1x32x16xf32>
    tpu.vector_store %arg9[%c0_26, %c0_27, %c0_28, %c0_29], %56 {strides = array<i32>} : memref<1x1x32x16xf32, #tpu.memory_space<vmem>>, vector<1x1x32x16xf32>,
    %c0_30 = arith.constant 0 : index
    %c0_31 = arith.constant 0 : index
    %c0_32 = arith.constant 0 : index
    %c0_33 = arith.constant 0 : index
    %57 = vector.load %arg10[%c0_30, %c0_31, %c0_32, %c0_33] : memref<1x1x32x1xf32, #tpu.memory_space<vmem>>, vector<1x1x32x1xf32>
    %58 = vector.shape_cast %57 : vector<1x1x32x1xf32> to vector<32x1xf32>
    %cst_34 = arith.constant dense<0.000000e+00> : vector<32xf32>
    %59 = vector.multi_reduction <add>, %48, %cst_34 [1] : vector<32x512xf32> to vector<32xf32>
    %60 = vector.shape_cast %59 : vector<32xf32> to vector<32x1xf32>
    %61 = arith.addf %58, %60 : vector<32x1xf32>
    %c0_35 = arith.constant 0 : index
    %c0_36 = arith.constant 0 : index
    %c0_37 = arith.constant 0 : index
    %c0_38 = arith.constant 0 : index
    %62 = vector.load %arg10[%c0_35, %c0_36, %c0_37, %c0_38] : memref<1x1x32x1xf32, #tpu.memory_space<vmem>>, vector<1x1x32x1xf32>
    %63 = vector.shape_cast %62 : vector<1x1x32x1xf32> to vector<32x1xf32>
    %64 = vector.shape_cast %61 : vector<32x1xf32> to vector<1x1x32x1xf32>
    tpu.vector_store %arg10[%c0_35, %c0_36, %c0_37, %c0_38], %64 {strides = array<i32>} : memref<1x1x32x1xf32, #tpu.memory_space<vmem>>, vector<1x1x32x1xf32>,
    return
  }
  func.func @transform_0(%arg0: i32, %arg1: i32, %arg2: i32) -> (i32, i32, i32) {
    %c1_i32 = arith.constant 1 : i32
    %0 = arith.muli %arg0, %c1_i32 : i32
    %1 = arith.addi %0, %arg2 : i32
    %c0_i32 = arith.constant 0 : i32
    %c0_i32_0 = arith.constant 0 : i32
    return %arg1, %c0_i32, %1 : i32, i32, i32
  }
  func.func @transform_1(%arg0: i32, %arg1: i32, %arg2: i32) -> (i32, i32) {
    %c0_i32 = arith.constant 0 : i32
    %c0_i32_0 = arith.constant 0 : i32
    %c0_i32_1 = arith.constant 0 : i32
    return %c0_i32, %c0_i32_0 : i32, i32
  }
  func.func @transform_2(%arg0: i32, %arg1: i32, %arg2: i32) -> (i32, i32) {
    %c0_i32 = arith.constant 0 : i32
    %c0_i32_0 = arith.constant 0 : i32
    %c0_i32_1 = arith.constant 0 : i32
    return %c0_i32, %c0_i32_0 : i32, i32
  }
  func.func @transform_3(%arg0: i32, %arg1: i32, %arg2: i32) -> (i32, i32) {
    %c0_i32 = arith.constant 0 : i32
    %c0_i32_0 = arith.constant 0 : i32
    %c0_i32_1 = arith.constant 0 : i32
    return %c0_i32, %c0_i32_0 : i32, i32
  }
  func.func @transform_4(%arg0: i32, %arg1: i32, %arg2: i32) -> (i32, i32) {
    %c0_i32 = arith.constant 0 : i32
    %c0_i32_0 = arith.constant 0 : i32
    %c0_i32_1 = arith.constant 0 : i32
    return %c0_i32, %c0_i32_0 : i32, i32
  }
  func.func @transform_5(%arg0: i32, %arg1: i32, %arg2: i32) -> (i32, i32) {
    %c0_i32 = arith.constant 0 : i32
    %c0_i32_0 = arith.constant 0 : i32
    %c0_i32_1 = arith.constant 0 : i32
    return %c0_i32, %c0_i32_0 : i32, i32
  }
  func.func @transform_6(%arg0: i32, %arg1: i32, %arg2: i32) -> (i32, i32, i32, i32) {
    %c0_i32 = arith.constant 0 : i32
    %c0_i32_0 = arith.constant 0 : i32
    %c0_i32_1 = arith.constant 0 : i32
    return %arg0, %arg1, %c0_i32, %c0_i32_0 : i32, i32, i32, i32
  }
  func.func @transform_7(%arg0: i32, %arg1: i32, %arg2: i32) -> (i32, i32, i32, i32) {
    %c0_i32 = arith.constant 0 : i32
    %c0_i32_0 = arith.constant 0 : i32
    %c0_i32_1 = arith.constant 0 : i32
    return %arg0, %arg1, %c0_i32, %c0_i32_0 : i32, i32, i32, i32
  }
}

module attributes {stable_mosaic.version = 11 : i64} {
  func.func @enc_kernel(%arg0: i32, %arg1: i32, %arg2: i32, %arg3: memref<1x16x512xf32, #tpu.memory_space<vmem>>, %arg4: memref<16x16xbf16, #tpu.memory_space<vmem>>, %arg5: memref<16x1xf32, #tpu.memory_space<vmem>>, %arg6: memref<32x16xbf16, #tpu.memory_space<vmem>>, %arg7: memref<32x1xf32, #tpu.memory_space<vmem>>, %arg8: memref<32x1xf32, #tpu.memory_space<vmem>>, %arg9: memref<1x1x32x16xf32, #tpu.memory_space<vmem>>, %arg10: memref<1x1x32x1xf32, #tpu.memory_space<vmem>>) attributes {dimension_semantics = [#tpu.dimension_semantics<parallel>, #tpu.dimension_semantics<parallel>, #tpu.dimension_semantics<arbitrary>], iteration_bounds = array<i64: 1, 2, 1>, scalar_prefetch = 0 : i64, scratch_operands = 0 : i64, tpu.core_type = #tpu.core_type<tc>, window_params = [{transform_indices = @transform_0, window_bounds = array<i64: 1, 16, 512>}, {pipeline_mode = #tpu.pipeline_mode<synchronous>, transform_indices = @transform_1, window_bounds = array<i64: 16, 16>}, {pipeline_mode = #tpu.pipeline_mode<synchronous>, transform_indices = @transform_2, window_bounds = array<i64: 16, 1>}, {pipeline_mode = #tpu.pipeline_mode<synchronous>, transform_indices = @transform_3, window_bounds = array<i64: 32, 16>}, {pipeline_mode = #tpu.pipeline_mode<synchronous>, transform_indices = @transform_4, window_bounds = array<i64: 32, 1>}, {pipeline_mode = #tpu.pipeline_mode<synchronous>, transform_indices = @transform_5, window_bounds = array<i64: 32, 1>}, {transform_indices = @transform_6, window_bounds = array<i64: 1, 1, 32, 16>}, {transform_indices = @transform_7, window_bounds = array<i64: 1, 1, 32, 1>}]} {
    %c0_i32 = arith.constant 0 : i32
    %0 = arith.cmpi eq, %arg2, %c0_i32 : i32
    %1 = arith.extui %0 : i1 to i32
    %c0_i32_0 = arith.constant 0 : i32
    %2 = arith.cmpi ne, %1, %c0_i32_0 : i32
    scf.if %2 {
      %cst_39 = arith.constant 0.000000e+00 : f32
      %65 = vector.broadcast %cst_39 : f32 to vector<32x16xf32>
      %c0_40 = arith.constant 0 : index
      %c0_41 = arith.constant 0 : index
      %c0_42 = arith.constant 0 : index
      %c0_43 = arith.constant 0 : index
      %66 = vector.load %arg9[%c0_40, %c0_41, %c0_42, %c0_43] : memref<1x1x32x16xf32, #tpu.memory_space<vmem>>, vector<1x1x32x16xf32>
      %67 = vector.shape_cast %66 : vector<1x1x32x16xf32> to vector<32x16xf32>
      %68 = vector.shape_cast %65 : vector<32x16xf32> to vector<1x1x32x16xf32>
      tpu.vector_store %arg9[%c0_40, %c0_41, %c0_42, %c0_43], %68 {strides = array<i32>} : memref<1x1x32x16xf32, #tpu.memory_space<vmem>>, vector<1x1x32x16xf32>,
      %cst_44 = arith.constant 0.000000e+00 : f32
      %69 = vector.broadcast %cst_44 : f32 to vector<32x1xf32>
      %c0_45 = arith.constant 0 : index
      %c0_46 = arith.constant 0 : index
      %c0_47 = arith.constant 0 : index
      %c0_48 = arith.constant 0 : index
      %70 = vector.load %arg10[%c0_45, %c0_46, %c0_47, %c0_48] : memref<1x1x32x1xf32, #tpu.memory_space<vmem>>, vector<1x1x32x1xf32>
      %71 = vector.shape_cast %70 : vector<1x1x32x1xf32> to vector<32x1xf32>
      %72 = vector.shape_cast %69 : vector<32x1xf32> to vector<1x1x32x1xf32>
      tpu.vector_store %arg10[%c0_45, %c0_46, %c0_47, %c0_48], %72 {strides = array<i32>} : memref<1x1x32x1xf32, #tpu.memory_space<vmem>>, vector<1x1x32x1xf32>,
    } else {
    }
    %c0 = arith.constant 0 : index
    %c0_1 = arith.constant 0 : index
    %c0_2 = arith.constant 0 : index
    %3 = vector.load %arg3[%c0, %c0_1, %c0_2] : memref<1x16x512xf32, #tpu.memory_space<vmem>>, vector<1x16x512xf32>
    %4 = vector.shape_cast %3 : vector<1x16x512xf32> to vector<16x512xf32>
    %c0_3 = arith.constant 0 : index
    %c0_4 = arith.constant 0 : index
    %5 = vector.load %arg4[%c0_3, %c0_4] : memref<16x16xbf16, #tpu.memory_space<vmem>>, vector<16x16xbf16>
    %6 = arith.truncf %4 : vector<16x512xf32> to vector<16x512xbf16>
    %cst = arith.constant dense<0.000000e+00> : vector<16x512xf32>
    %7 = tpu.matmul %5, %6, %cst {dimension_numbers = #tpu.dot_dimension_numbers<[1], [0], [0], [1], [0, 0, 1, 1], [], []>} : vector<16x16xbf16>, vector<16x512xbf16>, vector<16x512xf32> -> vector<16x512xf32>
    %c0_5 = arith.constant 0 : index
    %c0_6 = arith.constant 0 : index
    %8 = vector.load %arg5[%c0_5, %c0_6] : memref<16x1xf32, #tpu.memory_space<vmem>>, vector<16x1xf32>
    %9 = vector.broadcast %8 : vector<16x1xf32> to vector<16x512xf32>
    %10 = arith.addf %7, %9 : vector<16x512xf32>
    %cst_7 = arith.constant 0.000000e+00 : f32
    %11 = vector.broadcast %cst_7 : f32 to vector<16x512xf32>
    %12 = arith.maximumf %10, %11 : vector<16x512xf32>
    %13 = arith.truncf %12 : vector<16x512xf32> to vector<16x512xbf16>
    %c0_8 = arith.constant 0 : index
    %c0_9 = arith.constant 0 : index
    %14 = vector.load %arg6[%c0_8, %c0_9] : memref<32x16xbf16, #tpu.memory_space<vmem>>, vector<32x16xbf16>
    %cst_10 = arith.constant dense<0.000000e+00> : vector<32x512xf32>
    %15 = tpu.matmul %14, %13, %cst_10 {dimension_numbers = #tpu.dot_dimension_numbers<[1], [0], [0], [1], [0, 0, 1, 1], [], []>} : vector<32x16xbf16>, vector<16x512xbf16>, vector<32x512xf32> -> vector<32x512xf32>
    %16 = arith.mulf %12, %12 : vector<16x512xf32>
    %cst_11 = arith.constant dense<0.000000e+00> : vector<512xf32>
    %17 = vector.multi_reduction <add>, %16, %cst_11 [0] : vector<16x512xf32> to vector<512xf32>
    %18 = vector.shape_cast %17 : vector<512xf32> to vector<1x512xf32>
    %c0_12 = arith.constant 0 : index
    %c0_13 = arith.constant 0 : index
    %19 = vector.load %arg8[%c0_12, %c0_13] : memref<32x1xf32, #tpu.memory_space<vmem>>, vector<32x1xf32>
    %cst_14 = arith.constant 2.000000e+00 : f32
    %20 = vector.broadcast %cst_14 : f32 to vector<32x512xf32>
    %21 = arith.mulf %20, %15 : vector<32x512xf32>
    %22 = vector.broadcast %18 : vector<1x512xf32> to vector<32x512xf32>
    %23 = arith.subf %22, %21 : vector<32x512xf32>
    %c0_15 = arith.constant 0 : index
    %c0_16 = arith.constant 0 : index
    %24 = vector.load %arg7[%c0_15, %c0_16] : memref<32x1xf32, #tpu.memory_space<vmem>>, vector<32x1xf32>
    %25 = vector.broadcast %24 : vector<32x1xf32> to vector<32x512xf32>
    %26 = arith.addf %23, %25 : vector<32x512xf32>
    %27 = vector.broadcast %19 : vector<32x1xf32> to vector<32x512xf32>
    %28 = arith.mulf %27, %26 : vector<32x512xf32>
    %cst_17 = arith.constant dense<0xFF800000> : vector<512xf32>
    %29 = vector.multi_reduction <maximumf>, %28, %cst_17 [0] : vector<32x512xf32> to vector<512xf32>
    %30 = vector.shape_cast %29 : vector<512xf32> to vector<1x512xf32>
    %31 = vector.broadcast %30 : vector<1x512xf32> to vector<32x512xf32>
    %32 = arith.subf %28, %31 : vector<32x512xf32>
    %33 = math.exp %32 : vector<32x512xf32>
    %cst_18 = arith.constant dense<0.000000e+00> : vector<512xf32>
    %34 = vector.multi_reduction <add>, %33, %cst_18 [0] : vector<32x512xf32> to vector<512xf32>
    %35 = vector.shape_cast %34 : vector<512xf32> to vector<1x512xf32>
    %36 = tpu.reciprocal %35 {approx = true} : vector<1x512xf32> -> vector<1x512xf32>
    %37 = vector.broadcast %36 : vector<1x512xf32> to vector<32x512xf32>
    %38 = arith.mulf %33, %37 : vector<32x512xf32>
    %c512_i32 = arith.constant 512 : i32
    %39 = arith.muli %arg0, %c512_i32 : i32
    %c512_i32_19 = arith.constant 512 : i32
    %40 = arith.muli %arg2, %c512_i32_19 : i32
    %41 = arith.addi %39, %40 : i32
    %42 = tpu.iota {dimensions = array<i32: 1>} : vector<32x512xi32>
    %43 = vector.broadcast %41 : i32 to vector<32x512xi32>
    %44 = arith.addi %43, %42 : vector<32x512xi32>
    %c400_i32 = arith.constant 400 : i32
    %45 = vector.broadcast %c400_i32 : i32 to vector<32x512xi32>
    %46 = arith.cmpi slt, %44, %45 : vector<32x512xi32>
    %cst_20 = arith.constant 0.000000e+00 : f32
    %47 = vector.broadcast %cst_20 : f32 to vector<32x512xf32>
    %48 = arith.select %46, %38, %47 : vector<32x512xi1>, vector<32x512xf32>
    %c0_21 = arith.constant 0 : index
    %c0_22 = arith.constant 0 : index
    %c0_23 = arith.constant 0 : index
    %c0_24 = arith.constant 0 : index
    %49 = vector.load %arg9[%c0_21, %c0_22, %c0_23, %c0_24] : memref<1x1x32x16xf32, #tpu.memory_space<vmem>>, vector<1x1x32x16xf32>
    %50 = vector.shape_cast %49 : vector<1x1x32x16xf32> to vector<32x16xf32>
    %51 = arith.truncf %48 : vector<32x512xf32> to vector<32x512xbf16>
    %cst_25 = arith.constant dense<0.000000e+00> : vector<32x16xf32>
    %52 = tpu.matmul %51, %13, %cst_25 {dimension_numbers = #tpu.dot_dimension_numbers<[1], [1], [0], [0], [0, 0, 1, 0], [], []>} : vector<32x512xbf16>, vector<16x512xbf16>, vector<32x16xf32> -> vector<32x16xf32>
    %53 = arith.addf %50, %52 : vector<32x16xf32>
    %c0_26 = arith.constant 0 : index
    %c0_27 = arith.constant 0 : index
    %c0_28 = arith.constant 0 : index
    %c0_29 = arith.constant 0 : index
    %54 = vector.load %arg9[%c0_26, %c0_27, %c0_28, %c0_29] : memref<1x1x32x16xf32, #tpu.memory_space<vmem>>, vector<1x1x32x16xf32>
    %55 = vector.shape_cast %54 : vector<1x1x32x16xf32> to vector<32x16xf32>
    %56 = vector.shape_cast %53 : vector<32x16xf32> to vector<1x1x32x16xf32>
    tpu.vector_store %arg9[%c0_26, %c0_27, %c0_28, %c0_29], %56 {strides = array<i32>} : memref<1x1x32x16xf32, #tpu.memory_space<vmem>>, vector<1x1x32x16xf32>,
    %c0_30 = arith.constant 0 : index
    %c0_31 = arith.constant 0 : index
    %c0_32 = arith.constant 0 : index
    %c0_33 = arith.constant 0 : index
    %57 = vector.load %arg10[%c0_30, %c0_31, %c0_32, %c0_33] : memref<1x1x32x1xf32, #tpu.memory_space<vmem>>, vector<1x1x32x1xf32>
    %58 = vector.shape_cast %57 : vector<1x1x32x1xf32> to vector<32x1xf32>
    %cst_34 = arith.constant dense<0.000000e+00> : vector<32xf32>
    %59 = vector.multi_reduction <add>, %48, %cst_34 [1] : vector<32x512xf32> to vector<32xf32>
    %60 = vector.shape_cast %59 : vector<32xf32> to vector<32x1xf32>
    %61 = arith.addf %58, %60 : vector<32x1xf32>
    %c0_35 = arith.constant 0 : index
    %c0_36 = arith.constant 0 : index
    %c0_37 = arith.constant 0 : index
    %c0_38 = arith.constant 0 : index
    %62 = vector.load %arg10[%c0_35, %c0_36, %c0_37, %c0_38] : memref<1x1x32x1xf32, #tpu.memory_space<vmem>>, vector<1x1x32x1xf32>
    %63 = vector.shape_cast %62 : vector<1x1x32x1xf32> to vector<32x1xf32>
    %64 = vector.shape_cast %61 : vector<32x1xf32> to vector<1x1x32x1xf32>
    tpu.vector_store %arg10[%c0_35, %c0_36, %c0_37, %c0_38], %64 {strides = array<i32>} : memref<1x1x32x1xf32, #tpu.memory_space<vmem>>, vector<1x1x32x1xf32>,
    return
  }
  func.func @transform_0(%arg0: i32, %arg1: i32, %arg2: i32) -> (i32, i32, i32) {
    %c1_i32 = arith.constant 1 : i32
    %0 = arith.muli %arg0, %c1_i32 : i32
    %1 = arith.addi %0, %arg2 : i32
    %c0_i32 = arith.constant 0 : i32
    %c0_i32_0 = arith.constant 0 : i32
    return %arg1, %c0_i32, %1 : i32, i32, i32
  }
  func.func @transform_1(%arg0: i32, %arg1: i32, %arg2: i32) -> (i32, i32) {
    %c0_i32 = arith.constant 0 : i32
    %c0_i32_0 = arith.constant 0 : i32
    %c0_i32_1 = arith.constant 0 : i32
    return %c0_i32, %c0_i32_0 : i32, i32
  }
  func.func @transform_2(%arg0: i32, %arg1: i32, %arg2: i32) -> (i32, i32) {
    %c0_i32 = arith.constant 0 : i32
    %c0_i32_0 = arith.constant 0 : i32
    %c0_i32_1 = arith.constant 0 : i32
    return %c0_i32, %c0_i32_0 : i32, i32
  }
  func.func @transform_3(%arg0: i32, %arg1: i32, %arg2: i32) -> (i32, i32) {
    %c0_i32 = arith.constant 0 : i32
    %c0_i32_0 = arith.constant 0 : i32
    %c0_i32_1 = arith.constant 0 : i32
    return %c0_i32, %c0_i32_0 : i32, i32
  }
  func.func @transform_4(%arg0: i32, %arg1: i32, %arg2: i32) -> (i32, i32) {
    %c0_i32 = arith.constant 0 : i32
    %c0_i32_0 = arith.constant 0 : i32
    %c0_i32_1 = arith.constant 0 : i32
    return %c0_i32, %c0_i32_0 : i32, i32
  }
  func.func @transform_5(%arg0: i32, %arg1: i32, %arg2: i32) -> (i32, i32) {
    %c0_i32 = arith.constant 0 : i32
    %c0_i32_0 = arith.constant 0 : i32
    %c0_i32_1 = arith.constant 0 : i32
    return %c0_i32, %c0_i32_0 : i32, i32
  }
  func.func @transform_6(%arg0: i32, %arg1: i32, %arg2: i32) -> (i32, i32, i32, i32) {
    %c0_i32 = arith.constant 0 : i32
    %c0_i32_0 = arith.constant 0 : i32
    %c0_i32_1 = arith.constant 0 : i32
    return %arg0, %arg1, %c0_i32, %c0_i32_0 : i32, i32, i32, i32
  }
  func.func @transform_7(%arg0: i32, %arg1: i32, %arg2: i32) -> (i32, i32, i32, i32) {
    %c0_i32 = arith.constant 0 : i32
    %c0_i32_0 = arith.constant 0 : i32
    %c0_i32_1 = arith.constant 0 : i32
    return %arg0, %arg1, %c0_i32, %c0_i32_0 : i32, i32, i32, i32
  }
}

</mosaic_0001>

<bundles_post_ra>
// kernel: tpu_custom_call.1
= control target key start
LH: loop header
LB: loop body
LE: loop exit
PB: predicated region body
PF: predicated region fallthrough
CT: control target
= control target key end

     0   :  { %13 = vsyncpa [#allocation3], 0  ;;  %s1876_s0 = inlined_call_operand.hbm [shape: f32[2,16,512], index: 0, kind: input, shape index: {}]   ;;  %s1877_s1 = inlined_call_operand.vmem [shape: bf16[16,16], index: 1, kind: input, shape index: {}]   ;;  %s1878_s2 = inlined_call_operand.vmem [shape: f32[16,1], index: 2, kind: input, shape index: {}]   ;;  %s1879_s3 = inlined_call_operand.vmem [shape: bf16[32,16], index: 3, kind: input, shape index: {}]   ;;  %s1880_s4 = inlined_call_operand.vmem [shape: f32[32,1], index: 4, kind: input, shape index: {}]   ;;  %s1881_s5 = inlined_call_operand.vmem [shape: f32[32,1], index: 5, kind: input, shape index: {}]   ;;  %s1882_s6 = inlined_call_operand.vmem [shape: f32[1,2,32,16], index: 6, kind: output, shape index: {0}]   ;;  %s1883_s7 = inlined_call_operand.vmem [shape: f32[1,2,32,1], index: 7, kind: output, shape index: {1}]  }
   0x1   :  { %15 = vsyncpa [#allocation3 + $0x1], 0  ;;  %s1525_s24 = smov 0   ;;  %s1527_s25 = smov 0  }
   0x2   :  { %s1529_s26 = smov 0   ;;  %s1531_s27 = smov 0  }
   0x3   :  { %s1533_s28 = smov 0   ;;  %s1535_s29 = smov 0  }
   0x4 LB: > { %s1261_s30 = sadd.s32 4294967295, %s1478_s29   ;;  %s36_s8 = sadd.s32 1, %s1474_s28  ;;  %s1478_s29 = sphi %s1535_s29, %s21_s29   ;;  %s1474_s28 = sphi %s1533_s28, %s1891_s28   ;;  %s1470_s27 = sphi %s1531_s27, %s1890_s27   ;;  %s1466_s26 = sphi %s1529_s26, %s1889_s26   ;;  %s1462_s25 = sphi %s1527_s25, %s1888_s25   ;;  %s1458_s24 = sphi %s1525_s24, %s1887_s24  }
   0x5   : > { %p38_p0 = scmp.ge.s32.totalorder %s36_s8, 2  ;;  %s51_s9 = sadd.s32 1, %s1466_s26 }
   0x6   : > { %p58_p1 = scmp.ne.s32.totalorder %s1466_s26, %s1462_s25  ;;  %p59_p2 = scmp.eq.s32.totalorder %s1478_s29, 0 }
   0x7   : > { %s1893_s8 = smov (%p38_p0, %s36_s8), 0  ;;  %p64_p4 = scmp.ne.s32.totalorder %s1462_s25, %s1458_s24 }
   0x8   : > { %p1561_p3 = por %p59_p2, %p58_p1  ;;  %s46_s11 = ssub.s32 %s1474_s28, %s1893_s8 }
   0x9   : > { %p65_p5 = scmp.eq.s32.totalorder %s1261_s30, 0  ;;  %p49_p6 = scmp.eq.s32.totalorder %s46_s11, 0 }
   0xa   : > { %p1300_p8 = scmp.lt.s32.totalorder %s1478_s29, 2  ;;  %s264_s14 = sand.u32 1, %s1466_s26  }
   0xb   : > { %p1568_p7 = por %p65_p5, %p64_p4  ;;  %s1291_s15 = sshll.u32 %s1474_s28, 10 }
   0xc   : > { %s1574_s13 = scalar_select %p49_p6, %s1466_s26, %s51_s9  }
   0xd   : > { %s1265_s16 = sshll.u32 %s264_s14, 6  ;;  %s1581_s19 = scalar_lea.hbm %s1876_s0, %s1291_s15 }
   0xe   : > { %s268_s20 = scalar_lea.vmem [#allocation2], %s1265_s16  ;;  %p1585_p9 = pnand %p1300_p8, %p1561_p3 }
   0xf   : > { %s278_s21 = sshll.u32 %s268_s20, 4  ;;  %s1591_s23 = scalar_lea.sflag [#allocation3], %s264_s14  ;;  %s1589_s21 = int_to_ptr.vmem [resolvable:$true] %s278_s21 }
  0x10   : > { %s1398_s24 = scalar_lea.hbm %s1581_s19, 1024  ;;  %p1400_p11 = pneg %p1585_p9 }
  0x11   : > { %p1399_p10 = scmp.ne.s32.totalorder %s1581_s19, %s1398_s24  ;;  %s1403_s10 = scalar_lea.hbm %s1876_s0, 2048 }
  0x12   : > { %p1404_p0 = scmp.lt.u32.totalorder %s1581_s19, %s1876_s0  ;;  %p1405_p1 = scmp.lt.u32.totalorder %s1403_s10, %s1398_s24 }
  0x13   : > { %p1401_p12 = pnand %p1400_p11, %p1399_p10  ;;  %p1407_p3 = scmp.lt.u32.totalorder %s1398_s24, %s1581_s19 }
  0x14   : > { %p1406_p2 = por %p1405_p1, %p1404_p0 }
  0x15   : > { %p1402_p13 = pneg %p1401_p12 }
  0x16   : > { %p1408_p4 = por %p1407_p3, %p1406_p2 }
  0x18   : > { %p1409_p5 = pnand %p1408_p4, %p1402_p13 }
  0x1a   : > { %1412 = shalt.err (!%p1409_p5)
}
  0x1b   : > { %s1413_s14 = scalar_lea.vmem %s1589_s21, 1024  ;;  %s1480_s16 = smov [#allocation2]  }
  0x1c   : > { %p1414_p6 = scmp.ne.s32.totalorder %s1589_s21, %s1413_s14  ;;  %s1418_s17 = sshll.u32 %s1480_s16, 4  ;;  %s1419_s17 = int_to_ptr.vmem [resolvable:$false] %s1418_s17 }
  0x1d   : > { %s1420_s18 = scalar_lea.vmem %s1419_s17, 2048  ;;  %p1421_p12 = scmp.lt.s32.totalorder %s1589_s21, %s1419_s17 }
  0x1e   : > { %p1416_p8 = pnand %p1414_p6, %p1400_p11  ;;  %p1422_p0 = scmp.lt.s32.totalorder %s1420_s18, %s1413_s14 }
  0x20   : > { %p1417_p10 = pneg %p1416_p8  ;;  %p1423_p1 = por %p1422_p0, %p1421_p12 }
  0x22   : > { %p1424_p2 = pnand %p1423_p1, %p1417_p10 }
  0x24   : > { %1427 = shalt.err (!%p1424_p2)
}
  0x25   : > { %s1481_s20 = smov 512   ;;  %s1482_s24 = smov 32  }
  0x26   : > { %1299 = dma.hbm_to_vmem [thread:$0]  (!%p1585_p9), %s1581_s19, 1024, %s1589_s21, %s1591_s23, %s1481_s20, %s1481_s20, %s1482_s24  }
  0x27   : > { %p1268_p11 = scmp.ge.s32.totalorder %s1478_s29, 1  ;;  %p286_p13 = scmp.lt.s32.totalorder %s1478_s29, 3 }
  0x29   : > { %p287_p3 = pnand %p1268_p11, %p286_p13 }
  0x2a   : > { %s292_s30 = sand.u32 (!%p287_p3), 1, %s1462_s25  }
  0x2b   : > { %290 = sbr.rel (%p287_p3) target bundleno = 819 (0x333), region = 44  ;;  %s1269_s9 = sshll.u32 (!%p287_p3), %s292_s30, 6 }
  0x2c   : > { %s293_s10 = scalar_lea.sflag (!%p287_p3), [#allocation3], %s292_s30  ;;  %s296_s11 = scalar_lea.vmem (!%p287_p3), [#allocation2], %s1269_s9 }
  0x32   : > { %1453 = dma.done.wait (%p1568_p7), %s293_s10, 1024  }
  0x33   : > { %1455 = vsyncadd (%p1568_p7), %s293_s10, 4294966272  ;;  %v1483_v0 = vmov 0   ;;  %v376_v1 = vld [vmem:[%s296_s11 + $0x8] sm:$0xff]  ;;  %v378_v3 = vld [vmem:[%s296_s11 + $0x18] sm:$0xff]  ;;  %vm365_vm0 = vcmask 130048   ;;  %p344_p7 = scmp.lt.s32.totalorder %s1470_s27, 1 }
  0x34   : > { %442 = vmatprep.mubr.bf16.mxu0 %v1483_v0  ;;  %485 = vmatprep.mubr.bf16.mxu1 %v1483_v0  ;;  %v380_v2 = vld [vmem:[%s296_s11 + $0x28] sm:$0xff]  ;;  %v382_v5 = vld [vmem:[%s296_s11 + $0x38] sm:$0xff]  ;;  %v375_v6 = vld [vmem:[%s296_s11] sm:$0xff]  ;;  %vm370_vm1 = vcmask 7168  }
  0x35   : > { %1353 = vset.pattern.permute.xlu0 %v1483_v0  ;;  %1354 = vset.pattern.permute.xlu1 %v1483_v0  ;;  %v386_v4 = vpack.c.bf16 %v380_v2, %v376_v1  ;;  %v379_v7 = vld [vmem:[%s296_s11 + $0x20] sm:$0xff]  ;;  %v388_v8 = vpack.c.bf16 %v382_v5, %v378_v3  ;;  %v377_v10 = vld [vmem:[%s296_s11 + $0x10] sm:$0xff]  ;;  %v390_v15 = vld [vmem:[%s1878_s2 + $0x8] sm:$0xff]  ;;  %s1895_s27 = smov (!%p344_p7, %s1470_s27), 1 }
  0x36   : > { %v385_v9 = vpack.c.bf16 %v379_v7, %v375_v6  ;;  %v381_v11 = vld [vmem:[%s296_s11 + $0x30] sm:$0xff]  ;;  %v1355_v13 = vld [vmem:[%s1877_s1] sm:$0xff]   ;;  %v671_v17 = vld [vmem:[%s1881_s5 + $0x8] sm:$0xff]  ;;  %s1292_s20 = sshll.u32 %s1895_s27, 5 }
  0x37   : > { %410 = vmatprep.subr.bf16.mxu0 %v386_v4  ;;  %v387_v12 = vpack.c.bf16 %v381_v11, %v377_v10  ;;  %v389_v14 = vld [vmem:[%s1878_s2] sm:$0xff]  ;;  %453 = vmatprep.subr.bf16.mxu1 %v388_v8  ;;  %v708_v16 = vld [vmem:[%s1880_s4 + $0x10] sm:$0xff]  ;;  %v707_v20 = vld [vmem:[%s1880_s4 + $0x8] sm:$0xff]  ;;  %s1689_s9 = scalar_lea.vmem %s1883_s7, %s1292_s20  ;;  %s1820_s12 = scalar_lea.vmem %s1882_s6, %s1292_s20 }
  0x38   : > { %411 = vmatpush1.bf16.msra.mxu0 %v385_v9  ;;  %393 = vperm.xlu0 %1353, %v389_v14   ;;  %v672_v18 = vld [vmem:[%s1881_s5 + $0x10] sm:$0xff]  ;;  %v706_v19 = vld [vmem:[%s1880_s4] sm:$0xff]  ;;  %v709_v22 = vld [vmem:[%s1880_s4 + $0x18] sm:$0xff] }
  0x39   : > { %454 = vmatpush1.bf16.msra.mxu1 %v387_v12  ;;  %712 = vperm.xlu1 %1354, %v706_v19   ;;  %v670_v21 = vld [vmem:[%s1881_s5] sm:$0xff]  ;;  %v673_v23 = vld [vmem:[%s1881_s5 + $0x18] sm:$0xff]  ;;  %v1357_v4 = vld [vmem:[%s1879_s3 + $0x8] sm:$0xff]   ;;  %v1484_v12 = vmov 0.0  }
  0x3a   : > { %v1356_v2 = vld [vmem:[%s1879_s3] sm:$0xff]   ;;  %372 = vst.msk [vmem:[%s1689_s9 + $0x8] sm:$0xff] %vm370_vm1, %v1484_v12  ;;  %371 = vst.msk [vmem:[%s1689_s9] sm:$0xff] %vm370_vm1, %v1484_v12 }
  0x3b   : > { %1275 = vmatmul.mubr.msk.bf16.vlgmr.msra.gmra.mrb[0].mxu0 %vm365_vm0, %v1355_v13  ;;  %373 = vst.msk [vmem:[%s1689_s9 + $0x10] sm:$0xff] %vm370_vm1, %v1484_v12  ;;  %374 = vst.msk [vmem:[%s1689_s9 + $0x18] sm:$0xff] %vm370_vm1, %v1484_v12 }
  0x3c   : > { %1276 = vmatmul.mubr.msk.bf16.vlgmr.msra.gmra.mrb[0].mxu1 %vm365_vm0, %v1355_v13  ;;  %560 = vmatprep.mubr.bf16.mxu0 %v1483_v0  ;;  %366 = vst.msk [vmem:[%s1820_s12] sm:$0xff] %vm365_vm0, %v1484_v12  ;;  %367 = vst.msk [vmem:[%s1820_s12 + $0x8] sm:$0xff] %vm365_vm0, %v1484_v12 }
  0x3d   : > { %398 = vperm.xlu0 %1353, %v390_v15   ;;  %613 = vmatprep.mubr.bf16.mxu1 %v1483_v0  ;;  %368 = vst.msk [vmem:[%s1820_s12 + $0x10] sm:$0xff] %vm365_vm0, %v1484_v12  ;;  %369 = vst.msk [vmem:[%s1820_s12 + $0x18] sm:$0xff] %vm365_vm0, %v1484_v12 }
  0x3e   : > { %717 = vperm.xlu1 %1354, %v707_v20  }
  0x41   : > { %722 = vperm.xlu0 %1353, %v708_v16  }
  0x42   : > { %748 = vperm.xlu1 %1354, %v670_v21  }
  0x45   : > { %753 = vperm.xlu0 %1353, %v671_v17  }
  0x46   : > { %727 = vperm.xlu1 %1354, %v709_v22  }
  0x49   : > { %758 = vperm.xlu0 %1353, %v672_v18  }
  0x4a   : > { %763 = vperm.xlu1 %1354, %v673_v23  }
  0xb7   : > { %v394_v24 = vpop.permute.xlu0 %393 }
  0xb8   : > { %v713_v20 = vpop.permute.xlu1 %712 }
  0xbc   : > { %v399_v25 = vpop.permute.xlu0 %398 }
 0x10e   : > { %v444_v26 = vpop.f32.mrb[0].mxu0 }
 0x10f   : > { %v445_v27 = vadd.f32 %v444_v26, %v394_v24  ;;  %v487_v28 = vpop.f32.mrb[0].mxu1  ;;  %v446_v29 = vpop.f32.mrb[1].mxu0 }
 0x110   : > { %v488_v30 = vadd.f32 %v487_v28, %v394_v24  ;;  %v447_v31 = vadd.f32 %v446_v29, %v394_v24  ;;  %v489_v32 = vpop.f32.mrb[1].mxu1  ;;  %v448_v33 = vpop.f32.mrb[2].mxu0 }
 0x111   : > { %v496_v34 = vmax.f32 %v445_v27, 0.0  ;;  %v490_v35 = vadd.f32 %v489_v32, %v394_v24  ;;  %v449_v36 = vadd.f32 %v448_v33, %v399_v25  ;;  %v491_v37 = vpop.f32.mrb[2].mxu1  ;;  %v450_v38 = vpop.f32.mrb[3].mxu0 }
 0x112   : > { %v498_v39 = vmax.f32 %v488_v30, 0.0  ;;  %v497_v40 = vmax.f32 %v447_v31, 0.0  ;;  %v492_v41 = vadd.f32 %v491_v37, %v399_v25  ;;  %v451_v42 = vadd.f32 %v450_v38, %v399_v25  ;;  %v493_v43 = vpop.f32.mrb[3].mxu1  ;;  %v718_v27 = vpop.permute.xlu1 %717 }
 0x113   : > { %v499_v44 = vmax.f32 %v490_v35, 0.0  ;;  %v500_v45 = vmax.f32 %v449_v36, 0.0  ;;  %v494_v46 = vadd.f32 %v493_v43, %v399_v25  ;;  %v634_v47 = vmul.f32 %v496_v34, %v496_v34  ;;  %v1703_v25 = vpop.permute.xlu0 %722 }
 0x114   : > { %v636_v48 = vmul.f32 %v498_v39, %v498_v39  ;;  %v502_v49 = vmax.f32 %v492_v41, 0.0  ;;  %v501_v50 = vmax.f32 %v451_v42, 0.0  ;;  %v635_v51 = vmul.f32 %v497_v40, %v497_v40 }
 0x115   : > { %v504_v52 = vpack.c.bf16 %v500_v45, %v496_v34  ;;  %v638_v53 = vmul.f32 %v500_v45, %v500_v45  ;;  %v503_v54 = vmax.f32 %v494_v46, 0.0  ;;  %v637_v59 = vmul.f32 %v499_v44, %v499_v44 }
 0x116   : > { %v506_v55 = vpack.c.bf16 %v502_v49, %v498_v39  ;;  %v640_v56 = vmul.f32 %v502_v49, %v502_v49  ;;  %v505_v57 = vpack.c.bf16 %v501_v50, %v497_v40  ;;  %v639_v58 = vmul.f32 %v501_v50, %v501_v50 }
 0x117   : > { %v642_v60 = vadd.f32 %v638_v53, %v634_v47  ;;  %v507_v61 = vpack.c.bf16 %v503_v54, %v499_v44  ;;  %v641_v62 = vmul.f32 %v503_v54, %v503_v54  ;;  %v749_v54 = vpop.permute.xlu1 %748 }
 0x118   : > { %v656_v63 = vadd.f32 %v640_v56, %v636_v48  ;;  %v649_v1 = vadd.f32 %v639_v58, %v635_v51  ;;  %528 = vmatprep.subr.bf16.mxu0 %v505_v57 }
 0x119   : > { %v663_v3 = vadd.f32 %v641_v62, %v637_v59  ;;  %581 = vmatprep.subr.bf16.mxu1 %v507_v61  ;;  %529 = vmatpush1.bf16.msra.mxu0 %v504_v52  ;;  %v643_v5 = vrot.slane %v642_v60, 4 }
 0x11a   : > { %582 = vmatpush1.bf16.msra.mxu1 %v506_v55  ;;  %967 = vmatprep.subr.bf16.mxu0 %v505_v57  ;;  %v657_v6 = vrot.slane %v656_v63, 4  ;;  %v650_v7 = vrot.slane %v649_v1, 4 }
 0x11b   : > { %1016 = vmatprep.subr.bf16.mxu1 %v507_v61  ;;  %v664_v8 = vrot.slane %v663_v3, 4 }
 0x11c   : > { %1279 = vmatmul.mubr.msk.bf16.vlgmr.msra.gmra.mrb[4].mxu0 %vm365_vm0, %v1356_v2  ;;  %v658_v9 = vadd.f32 %v657_v6, %v656_v63  ;;  %v651_v10 = vadd.f32 %v650_v7, %v649_v1  ;;  %v754_v63 = vpop.permute.xlu0 %753 }
 0x11d   : > { %1281 = vmatmul.mubr.msk.bf16.vlgmr.msra.gmra.mrb[4].mxu1 %vm365_vm0, %v1356_v2  ;;  %570 = vmatprep.mubr.bf16.mxu0 %v1483_v0  ;;  %v665_v11 = vadd.f32 %v664_v8, %v663_v3 }
 0x11e   : > { %623 = vmatprep.mubr.bf16.mxu1 %v1483_v0  ;;  %v644_v0 = vadd.f32 %v643_v5, %v642_v60  ;;  %v659_v14 = vrot.slane %v658_v9, 2  ;;  %v652_v15 = vrot.slane %v651_v10, 2 }
 0x11f   : > { %v666_v16 = vrot.slane %v665_v11, 2 }
 0x120   : > { %v645_v13 = vrot.slane %v644_v0, 2  ;;  %v660_v18 = vadd.f32 %v659_v14, %v658_v9  ;;  %v653_v19 = vadd.f32 %v652_v15, %v651_v10 }
 0x121   : > { %v667_v21 = vadd.f32 %v666_v16, %v665_v11 }
 0x122   : > { %968 = vmatpush1.bf16.xpose.msra.mxu0 %v504_v52  ;;  %v646_v17 = vadd.f32 %v645_v13, %v644_v0  ;;  %v661_v23 = vrot.slane %v660_v18, 1  ;;  %v654_v24 = vrot.slane %v653_v19, 1 }
 0x123   : > { %1017 = vmatpush1.bf16.xpose.msra.mxu1 %v506_v55  ;;  %v668_v26 = vrot.slane %v667_v21, 1 }
 0x124   : > { %1280 = vmatmul.mubr.msk.bf16.gmra.mrb[8].mxu0 %vm365_vm0, %v1357_v4  ;;  %v647_v22 = vrot.slane %v646_v17, 1  ;;  %v1707_v33 = vadd.f32 %v661_v23, %v660_v18  ;;  %v1709_v35 = vadd.f32 %v654_v24, %v653_v19  ;;  %v728_v24 = vpop.permute.xlu1 %727 }
 0x125   : > { %1282 = vmatmul.mubr.msk.bf16.gmra.mrb[8].mxu1 %vm365_vm0, %v1357_v4  ;;  %v1712_v40 = vadd.f32 %v668_v26, %v667_v21 }
 0x126   : > { %v1705_v29 = vadd.f32 %v647_v22, %v646_v17 }
 0x1ef   : > { %v562_v28 = vpop.f32.mrb[4].mxu0 }
 0x1f0   : > { %v674_v30 = vmul.f32 2.0, %v562_v28  ;;  %v615_v31 = vpop.f32.mrb[4].mxu1  ;;  %v564_v32 = vpop.f32.mrb[5].mxu0 }
 0x1f1   : > { %v676_v34 = vmul.f32 2.0, %v615_v31  ;;  %v675_v36 = vmul.f32 2.0, %v564_v32  ;;  %v617_v37 = vpop.f32.mrb[5].mxu1  ;;  %v566_v38 = vpop.f32.mrb[6].mxu0 }
 0x1f2   : > { %v690_v39 = vsub.f32 %v1705_v29, %v674_v30  ;;  %v677_v41 = vmul.f32 2.0, %v617_v37  ;;  %v678_v42 = vmul.f32 2.0, %v566_v38  ;;  %v619_v43 = vpop.f32.mrb[6].mxu1  ;;  %v568_v44 = vpop.f32.mrb[7].mxu0 }
 0x1f3   : > { %v692_v45 = vsub.f32 %v1707_v33, %v676_v34  ;;  %v691_v46 = vsub.f32 %v1709_v35, %v675_v36  ;;  %v680_v47 = vmul.f32 2.0, %v619_v43  ;;  %v679_v48 = vmul.f32 2.0, %v568_v44  ;;  %v621_v49 = vpop.f32.mrb[7].mxu1  ;;  %v759_v38 = vpop.permute.xlu0 %758 }
 0x1f4   : > { %v730_v50 = vadd.f32 %v713_v20, %v690_v39  ;;  %v693_v51 = vsub.f32 %v1712_v40, %v677_v41  ;;  %v694_v52 = vsub.f32 %v1705_v29, %v678_v42  ;;  %v681_v53 = vmul.f32 2.0, %v621_v49 }
 0x1f5   : > { %v732_v55 = vadd.f32 %v713_v20, %v692_v45  ;;  %v731_v56 = vadd.f32 %v713_v20, %v691_v46  ;;  %v696_v57 = vsub.f32 %v1707_v33, %v680_v47  ;;  %v695_v58 = vsub.f32 %v1709_v35, %v679_v48 }
 0x1f6   : > { %v1720_v59 = vmul.f32 %v749_v54, %v730_v50  ;;  %v733_v60 = vadd.f32 %v713_v20, %v693_v51  ;;  %v734_v61 = vadd.f32 %v718_v27, %v694_v52  ;;  %v697_v62 = vsub.f32 %v1712_v40, %v681_v53 }
 0x1f7   : > { %v1723_v1 = vmul.f32 %v749_v54, %v732_v55  ;;  %v1725_v2 = vmul.f32 %v749_v54, %v731_v56  ;;  %v736_v3 = vadd.f32 %v718_v27, %v696_v57  ;;  %v735_v4 = vadd.f32 %v718_v27, %v695_v58  ;;  %v572_v5 = vpop.f32.mrb[8].mxu0  ;;  %v764_v56 = vpop.permute.xlu1 %763 }
 0x1f8   : > { %v1727_v6 = vmul.f32 %v749_v54, %v733_v60  ;;  %v1729_v7 = vmul.f32 %v754_v63, %v734_v61  ;;  %v737_v8 = vadd.f32 %v718_v27, %v697_v62  ;;  %v682_v0 = vmul.f32 2.0, %v572_v5  ;;  %v625_v9 = vpop.f32.mrb[8].mxu1  ;;  %v574_v10 = vpop.f32.mrb[9].mxu0 }
 0x1f9   : > { %v1731_v11 = vmul.f32 %v754_v63, %v736_v3  ;;  %v1733_v13 = vmul.f32 %v754_v63, %v735_v4  ;;  %v684_v14 = vmul.f32 2.0, %v625_v9  ;;  %v683_v15 = vmul.f32 2.0, %v574_v10  ;;  %v627_v16 = vpop.f32.mrb[9].mxu1  ;;  %v576_v17 = vpop.f32.mrb[10].mxu0 }
 0x1fa   : > { %v782_v18 = vmax.f32 %v1720_v59, %v1729_v7  ;;  %v1737_v19 = vmul.f32 %v754_v63, %v737_v8  ;;  %v698_v20 = vsub.f32 %v1705_v29, %v682_v0  ;;  %v685_v21 = vmul.f32 2.0, %v627_v16  ;;  %v629_v22 = vpop.f32.mrb[10].mxu1  ;;  %v578_v23 = vpop.f32.mrb[11].mxu0 }
 0x1fb   : > { %v800_v26 = vmax.f32 %v1723_v1, %v1731_v11  ;;  %v791_v27 = vmax.f32 %v1725_v2, %v1733_v13  ;;  %v700_v28 = vsub.f32 %v1707_v33, %v684_v14  ;;  %v699_v30 = vsub.f32 %v1709_v35, %v683_v15  ;;  %v631_v31 = vpop.f32.mrb[11].mxu1 }
 0x1fc   : > { %v809_v32 = vmax.f32 %v1727_v6, %v1737_v19  ;;  %v738_v34 = vadd.f32 %v1703_v25, %v698_v20  ;;  %v701_v36 = vsub.f32 %v1712_v40, %v685_v21  ;;  %v686_v37 = vmul.f32 2.0, %v576_v17 }
 0x1fd   : > { %v740_v39 = vadd.f32 %v1703_v25, %v700_v28  ;;  %v739_v41 = vadd.f32 %v1703_v25, %v699_v30  ;;  %v688_v42 = vmul.f32 2.0, %v629_v22  ;;  %v687_v43 = vmul.f32 2.0, %v578_v23 }
 0x1fe   : > { %v774_v44 = vmul.f32 %v759_v38, %v738_v34  ;;  %v741_v45 = vadd.f32 %v1703_v25, %v701_v36  ;;  %v702_v46 = vsub.f32 %v1705_v29, %v686_v37  ;;  %v689_v47 = vmul.f32 2.0, %v631_v31 }
 0x1ff   : > { %v1754_v48 = vmul.f32 %v759_v38, %v740_v39  ;;  %v1756_v49 = vmul.f32 %v759_v38, %v739_v41  ;;  %v704_v50 = vsub.f32 %v1707_v33, %v688_v42  ;;  %v703_v51 = vsub.f32 %v1709_v35, %v687_v43 }
 0x200   : > { %v783_v52 = vmax.f32 %v782_v18, %v774_v44  ;;  %v1760_v53 = vmul.f32 %v759_v38, %v741_v45  ;;  %v742_v54 = vadd.f32 %v728_v24, %v702_v46  ;;  %v705_v55 = vsub.f32 %v1712_v40, %v689_v47 }
 0x201   : > { %v801_v25 = vmax.f32 %v800_v26, %v1754_v48  ;;  %v792_v29 = vmax.f32 %v791_v27, %v1756_v49  ;;  %v744_v57 = vadd.f32 %v728_v24, %v704_v50  ;;  %v743_v58 = vadd.f32 %v728_v24, %v703_v51 }
 0x202   : > { %v810_v60 = vmax.f32 %v809_v32, %v1760_v53  ;;  %v778_v61 = vmul.f32 %v764_v56, %v742_v54  ;;  %v745_v62 = vadd.f32 %v728_v24, %v705_v55 }
 0x203   : > { %v780_v33 = vmul.f32 %v764_v56, %v744_v57  ;;  %v1766_v63 = vmul.f32 %v764_v56, %v743_v58 }
 0x204   : > { %v784_v35 = vmax.f32 %v783_v52, %v778_v61  ;;  %v1768_v3 = vmul.f32 %v764_v56, %v745_v62 }
 0x205   : > { %v802_v4 = vmax.f32 %v801_v25, %v780_v33  ;;  %v793_v40 = vmax.f32 %v792_v29, %v1766_v63 }
 0x206   : > { %v785_v5 = vrot.slane %v784_v35, 4  ;;  %v811_v8 = vmax.f32 %v810_v60, %v1768_v3 }
 0x207   : > { %v803_v0 = vrot.slane %v802_v4, 4  ;;  %v794_v9 = vrot.slane %v793_v40, 4 }
 0x208   : > { %v786_v10 = vmax.f32 %v784_v35, %v785_v5  ;;  %v812_v14 = vrot.slane %v811_v8, 4 }
 0x209   : > { %v804_v15 = vmax.f32 %v802_v4, %v803_v0  ;;  %v795_v16 = vmax.f32 %v793_v40, %v794_v9 }
 0x20a   : > { %v787_v17 = vrot.slane %v786_v10, 2  ;;  %v813_v18 = vmax.f32 %v811_v8, %v812_v14 }
 0x20b   : > { %v805_v20 = vrot.slane %v804_v15, 2  ;;  %v796_v21 = vrot.slane %v795_v16, 2 }
 0x20c   : > { %v788_v22 = vmax.f32 %v786_v10, %v787_v17  ;;  %v814_v23 = vrot.slane %v813_v18, 2 }
 0x20d   : > { %v806_v24 = vmax.f32 %v804_v15, %v805_v20  ;;  %v797_v26 = vmax.f32 %v795_v16, %v796_v21 }
 0x20e   : > { %v789_v27 = vrot.slane %v788_v22, 1  ;;  %v815_v28 = vmax.f32 %v813_v18, %v814_v23 }
 0x20f   : > { %v807_v30 = vrot.slane %v806_v24, 1  ;;  %v798_v31 = vrot.slane %v797_v26, 1 }
 0x210   : > { %v790_v32 = vmax.f32 %v788_v22, %v789_v27  ;;  %v816_v37 = vrot.slane %v815_v28, 1 }
 0x211   : > { %v808_v34 = vmax.f32 %v806_v24, %v807_v30  ;;  %v799_v36 = vmax.f32 %v797_v26, %v798_v31 }
 0x212   : > { %v818_v38 = vsub.f32 %v1720_v59, %v790_v32  ;;  %v822_v39 = vsub.f32 %v1729_v7, %v790_v32  ;;  %v826_v41 = vsub.f32 %v774_v44, %v790_v32  ;;  %v830_v42 = vsub.f32 %v778_v61, %v790_v32 }
 0x213   : > { %v820_v43 = vsub.f32 %v1723_v1, %v808_v34  ;;  %v824_v45 = vsub.f32 %v1731_v11, %v808_v34  ;;  %v828_v46 = vsub.f32 %v1754_v48, %v808_v34  ;;  %v832_v47 = vsub.f32 %v780_v33, %v808_v34 }
 0x214   : > { %v834_v50 = vmul.f32 1.442695, %v818_v38  ;;  %v842_v51 = vmul.f32 1.442695, %v822_v39  ;;  %v850_v52 = vmul.f32 1.442695, %v826_v41  ;;  %v827_v54 = vsub.f32 %v1756_v49, %v799_v36 }
 0x215   : > { %v858_v55 = vmul.f32 1.442695, %v830_v42  ;;  %v831_v56 = vsub.f32 %v1766_v63, %v799_v36  ;;  %v838_v59 = vmul.f32 1.442695, %v820_v43  ;;  %v846_v7 = vmul.f32 1.442695, %v824_v45 }
 0x216   : > { %1358 = vpow2.f32 %v834_v50  ;;  %v817_v44 = vmax.f32 %v815_v28, %v816_v37  ;;  %v819_v1 = vsub.f32 %v1725_v2, %v799_v36  ;;  %v854_v11 = vmul.f32 1.442695, %v828_v46 }
 0x217   : > { %1360 = vpow2.f32 %v842_v51  ;;  %v823_v48 = vsub.f32 %v1733_v13, %v799_v36  ;;  %v862_v58 = vmul.f32 1.442695, %v832_v47  ;;  %v860_v8 = vmul.f32 1.442695, %v831_v56 }
 0x218   : > { %1362 = vpow2.f32 %v850_v52  ;;  %v821_v25 = vsub.f32 %v1727_v6, %v817_v44  ;;  %v825_v29 = vsub.f32 %v1737_v19, %v817_v44  ;;  %v829_v49 = vsub.f32 %v1760_v53, %v817_v44 }
 0x219   : > { %1364 = vpow2.f32 %v858_v55  ;;  %v833_v57 = vsub.f32 %v1768_v3, %v817_v44  ;;  %v836_v13 = vmul.f32 1.442695, %v819_v1  ;;  %v844_v19 = vmul.f32 1.442695, %v823_v48 }
 0x21a   : > { %1366 = vpow2.f32 %v838_v59  ;;  %v840_v60 = vmul.f32 1.442695, %v821_v25  ;;  %v848_v61 = vmul.f32 1.442695, %v825_v29  ;;  %v856_v2 = vmul.f32 1.442695, %v829_v49 }
 0x21b   : > { %1368 = vpow2.f32 %v846_v7  ;;  %v864_v62 = vmul.f32 1.442695, %v833_v57  ;;  %v852_v3 = vmul.f32 1.442695, %v827_v54 }
 0x21c   : > { %1370 = vpow2.f32 %v854_v11  ;;  %v925_v11 = vlaneseq }
 0x21d   : > { %1372 = vpow2.f32 %v862_v58 }
 0x21e   : > { %1374 = vpow2.f32 %v840_v60  ;;  %v926_v57 = vand.u32 127, %v925_v11 }
 0x21f   : > { %1376 = vpow2.f32 %v848_v61 }
 0x220   : > { %v1785_v33 = vpop.eup %1358  ;;  %1378 = vpow2.f32 %v856_v2 }
 0x221   : > { %v1787_v6 = vpop.eup %1360  ;;  %1380 = vpow2.f32 %v864_v62 }
 0x222   : > { %v1789_v53 = vpop.eup %1362  ;;  %v866_v63 = vadd.f32 %v1787_v6, %v1785_v33  ;;  %1382 = vpow2.f32 %v836_v13 }
 0x223   : > { %v1793_v35 = vpop.eup %1364  ;;  %1384 = vpow2.f32 %v844_v19 }
 0x224   : > { %v1795_v4 = vpop.eup %1366  ;;  %v867_v40 = vadd.f32 %v1789_v53, %v866_v63  ;;  %1386 = vpow2.f32 %v852_v3  ;;  %v929_v3 = vadd.s32 384, %v926_v57 }
 0x225   : > { %v1798_v5 = vpop.eup %1368  ;;  %1388 = vpow2.f32 %v860_v8 }
 0x226   : > { %v868_v0 = vadd.f32 %v1793_v35, %v867_v40  ;;  %v884_v9 = vadd.f32 %v1798_v5, %v1795_v4  ;;  %v1371_v10 = vpop.eup %1370  ;;  %vm938_vm2 = vcmp.lt.s32.totalorder %v929_v3, 400 }
 0x227   : > { %v1373_v16 = vpop.eup %1372  ;;  %vm1283_vm3 = vmpackc.low %vm938_vm2, %vm938_vm2 }
 0x228   : > { %v869_v14 = vrot.slane %v868_v0, 4  ;;  %v885_v15 = vadd.f32 %v1371_v10, %v884_v9  ;;  %v1375_v17 = vpop.eup %1374 }
 0x229   : > { %v1377_v21 = vpop.eup %1376 }
 0x22a   : > { %v870_v18 = vadd.f32 %v869_v14, %v868_v0  ;;  %v886_v20 = vadd.f32 %v1373_v16, %v885_v15  ;;  %v1379_v22 = vpop.eup %1378  ;;  %v893_v26 = vadd.f32 %v1377_v21, %v1375_v17 }
 0x22b   : > { %v1381_v27 = vpop.eup %1380 }
 0x22c   : > { %v871_v23 = vrot.slane %v870_v18, 2  ;;  %v887_v24 = vrot.slane %v886_v20, 4  ;;  %v1383_v28 = vpop.eup %1382  ;;  %v894_v32 = vadd.f32 %v1379_v22, %v893_v26 }
 0x22d   : > { %v1385_v34 = vpop.eup %1384 }
 0x22e   : > { %v872_v30 = vadd.f32 %v871_v23, %v870_v18  ;;  %v888_v31 = vadd.f32 %v887_v24, %v886_v20  ;;  %v895_v38 = vadd.f32 %v1381_v27, %v894_v32  ;;  %v875_v39 = vadd.f32 %v1385_v34, %v1383_v28  ;;  %v1387_v41 = vpop.eup %1386 }
 0x22f   : > { %v1389_v47 = vpop.eup %1388 }
 0x230   : > { %v873_v36 = vrot.slane %v872_v30, 1  ;;  %v889_v37 = vrot.slane %v888_v31, 2  ;;  %v896_v45 = vrot.slane %v895_v38, 4  ;;  %v876_v46 = vadd.f32 %v1387_v41, %v875_v39 }
 0x232   : > { %v874_v42 = vadd.f32 %v873_v36, %v872_v30  ;;  %v890_v43 = vadd.f32 %v889_v37, %v888_v31  ;;  %v897_v51 = vadd.f32 %v896_v45, %v895_v38  ;;  %v877_v52 = vadd.f32 %v1389_v47, %v876_v46  ;;  %v1074_v46 = vld [vmem:[%s1689_s9 + $0x8] sm:$0xff] }
 0x234   : > { %1390 = vrcp.f32 %v874_v42  ;;  %v891_v50 = vrot.slane %v890_v43, 1  ;;  %v898_v55 = vrot.slane %v897_v51, 2  ;;  %v878_v56 = vrot.slane %v877_v52, 4 }
 0x236   : > { %v892_v54 = vadd.f32 %v891_v50, %v890_v43  ;;  %v899_v59 = vadd.f32 %v898_v55, %v897_v51  ;;  %v879_v7 = vadd.f32 %v878_v56, %v877_v52  ;;  %v1075_v55 = vld [vmem:[%s1689_s9 + $0x10] sm:$0xff] }
 0x238   : > { %1392 = vrcp.f32 %v892_v54  ;;  %v900_v44 = vrot.slane %v899_v59, 1  ;;  %v880_v1 = vrot.slane %v879_v7, 2 }
 0x23a   : > { %v901_v48 = vadd.f32 %v900_v44, %v899_v59  ;;  %v881_v25 = vadd.f32 %v880_v1, %v879_v7  ;;  %v1076_v7 = vld [vmem:[%s1689_s9 + $0x18] sm:$0xff] }
 0x23c   : > { %1394 = vrcp.f32 %v901_v48  ;;  %v882_v49 = vrot.slane %v881_v25, 1 }
 0x23e   : > { %v1391_v29 = vpop.eup %1390  ;;  %v883_v62 = vadd.f32 %v882_v49, %v881_v25  ;;  %v955_v49 = vld [vmem:[%s1820_s12] sm:$0xff] }
 0x23f   : > { %v906_v58 = vmul.f32 %v1391_v29, %v1785_v33  ;;  %v910_v60 = vmul.f32 %v1391_v29, %v1787_v6  ;;  %v914_v61 = vmul.f32 %v1391_v29, %v1789_v53  ;;  %v918_v2 = vmul.f32 %v1391_v29, %v1793_v35 }
 0x240   : > { %1396 = vrcp.f32 %v883_v62 }
 0x241   : > { %v959_v13 = vpack.c.bf16 %v910_v60, %v906_v58  ;;  %v963_v19 = vpack.c.bf16 %v918_v2, %v914_v61 }
 0x242   : > { %v1393_v63 = vpop.eup %1392 }
 0x243   : > { %v908_v40 = vmul.f32 %v1393_v63, %v1795_v4  ;;  %v912_v8 = vmul.f32 %v1393_v63, %v1798_v5  ;;  %v916_v0 = vmul.f32 %v1393_v63, %v1371_v10  ;;  %v920_v9 = vmul.f32 %v1393_v63, %v1373_v16 }
 0x245   : > { %v961_v14 = vpack.c.bf16 %v912_v8, %v908_v40  ;;  %v965_v33 = vpack.c.bf16 %v920_v9, %v916_v0 }
 0x246   : > { %v1395_v6 = vpop.eup %1394 }
 0x247   : > { %v909_v15 = vmul.f32 %v1395_v6, %v1375_v17  ;;  %v913_v53 = vmul.f32 %v1395_v6, %v1377_v21  ;;  %v917_v18 = vmul.f32 %v1395_v6, %v1379_v22  ;;  %v921_v35 = vmul.f32 %v1395_v6, %v1381_v27 }
 0x249   : > { %v1284_v20 = vpack.c.bf16 %v913_v53, %v909_v15  ;;  %v1287_v23 = vpack.c.bf16 %v921_v35, %v917_v18  ;;  %v946_v36 = vsel %vm938_vm2, %v913_v53, 0.0  ;;  %v954_v42 = vsel %vm938_vm2, %v921_v35, 0.0 }
 0x24a   : > { %v1397_v24 = vpop.eup %1396 }
 0x24b   : > { %v907_v26 = vmul.f32 %v1397_v24, %v1383_v28  ;;  %v911_v4 = vmul.f32 %v1397_v24, %v1385_v34  ;;  %1285 = vmatprep.mubr.msk.bf16.mxu1 %vm1283_vm3, %v1284_v20  ;;  %v915_v5 = vmul.f32 %v1397_v24, %v1387_v41  ;;  %v919_v10 = vmul.f32 %v1397_v24, %v1389_v47  ;;  %v1073_v47 = vld [vmem:[%s1689_s9] sm:$0xff] }
 0x24c   : > { %1049 = vmatmul.mubr.bf16.vlgmr.msra.gmra.mrb[12].mxu1 %v961_v14  ;;  %v942_v28 = vsel %vm938_vm2, %v909_v15, 0.0  ;;  %v950_v41 = vsel %vm938_vm2, %v917_v18, 0.0  ;;  %v958_v15 = vld [vmem:[%s1820_s12 + $0x18] sm:$0xff] }
 0x24d   : > { %v960_v16 = vpack.c.bf16 %v911_v4, %v907_v26  ;;  %v964_v30 = vpack.c.bf16 %v919_v10, %v915_v5  ;;  %1288 = vmatprep.mubr.msk.bf16.mxu1 %vm1283_vm3, %v1287_v23  ;;  %v1082_v31 = vadd.f32 %v911_v4, %v910_v60  ;;  %v1077_v17 = vadd.f32 %v907_v26, %v906_v58 }
 0x24e   : > { %v1087_v21 = vadd.f32 %v915_v5, %v914_v61  ;;  %v1092_v22 = vadd.f32 %v919_v10, %v918_v2  ;;  %v956_v61 = vld [vmem:[%s1820_s12 + $0x8] sm:$0xff] }
 0x24f   : > { %999 = vmatprep.mubr.bf16.mxu0 %v960_v16  ;;  %v1083_v27 = vadd.f32 %v1082_v31, %v912_v8  ;;  %v1078_v32 = vadd.f32 %v1077_v17, %v908_v40 }
 0x250   : > { %1000 = vmatmul.mubr.bf16.vlgmr.msra.gmra.mrb[12].mxu0 %v959_v13  ;;  %v1088_v34 = vadd.f32 %v1087_v21, %v916_v0  ;;  %v1093_v37 = vadd.f32 %v1092_v22, %v920_v9  ;;  %v957_v9 = vld [vmem:[%s1820_s12 + $0x10] sm:$0xff] }
 0x251   : > { %1007 = vmatprep.mubr.bf16.mxu0 %v964_v30  ;;  %v1084_v38 = vadd.f32 %v1083_v27, %v946_v36  ;;  %v1079_v39 = vadd.f32 %v1078_v32, %v942_v28 }
 0x252   : > { %v1089_v43 = vadd.f32 %v1088_v34, %v950_v41  ;;  %v1094_v45 = vadd.f32 %v1093_v37, %v954_v42 }
 0x253   : > { %1085 = vadd.xlane.f32.xlu1 %v1084_v38  ;;  %1080 = vadd.xlane.f32.xlu0 %v1079_v39 }
 0x254   : > { %1057 = vmatmul.mubr.bf16.gmra.mrb[16].mxu1 %v965_v33 }
 0x257   : > { %1090 = vadd.xlane.f32.xlu0 %v1089_v43 }
 0x258   : > { %1008 = vmatmul.mubr.bf16.gmra.mrb[16].mxu0 %v963_v19 }
 0x25b   : > { %1095 = vadd.xlane.f32.xlu0 %v1094_v45 }
 0x2e0   : > { %v1086_v50 = vpop.xlane.xlu1 %1085  ;;  %v1081_v51 = vpop.xlane.xlu0 %1080 }
 0x2e1   : > { %v1098_v52 = vadd.f32 %v1086_v50, %v1074_v46  ;;  %v1097_v54 = vadd.f32 %v1081_v51, %v1073_v47 }
 0x2e3   : > { %1103 = vst.msk [vmem:[%s1689_s9 + $0x8] sm:$0xff] %vm370_vm1, %v1098_v52  ;;  %1102 = vst.msk [vmem:[%s1689_s9] sm:$0xff] %vm370_vm1, %v1097_v54 }
 0x2e4   : > { %v1091_v56 = vpop.xlane.xlu0 %1090 }
 0x2e5   : > { %v1099_v59 = vadd.f32 %v1091_v56, %v1075_v55 }
 0x2e7   : > { %1104 = vst.msk [vmem:[%s1689_s9 + $0x10] sm:$0xff] %vm370_vm1, %v1099_v59 }
 0x2e8   : > { %v1096_v12 = vpop.xlane.xlu0 %1095 }
 0x2e9   : > { %v1100_v44 = vadd.f32 %v1096_v12, %v1076_v7 }
 0x2eb   : > { %1105 = vst.msk [vmem:[%s1689_s9 + $0x18] sm:$0xff] %vm370_vm1, %v1100_v44 }
 0x31f   : > { %v1050_v1 = vpop.f32.mrb[12].mxu1 }
 0x320   : > { %v1052_v11 = vpop.f32.mrb[13].mxu1 }
 0x321   : > { %v1053_v48 = vpop.f32.mrb[14].mxu1 }
 0x322   : > { %v1055_v25 = vpop.f32.mrb[15].mxu1 }
 0x323   : > { %v1001_v29 = vpop.f32.mrb[12].mxu0 }
 0x324   : > { %v1051_v57 = vadd.f32 %v1050_v1, %v1001_v29  ;;  %v1003_v58 = vpop.f32.mrb[13].mxu0 }
 0x325   : > { %v1004_v60 = vpop.f32.mrb[14].mxu0 }
 0x326   : > { %v1065_v2 = vadd.f32 %v1051_v57, %v955_v49  ;;  %v1054_v62 = vadd.f32 %v1053_v48, %v1004_v60  ;;  %v1006_v13 = vpop.f32.mrb[15].mxu0 }
 0x327   : > { %v1058_v19 = vpop.f32.mrb[16].mxu1 }
 0x328   : > { %1069 = vst.msk [vmem:[%s1820_s12] sm:$0xff] %vm365_vm0, %v1065_v2  ;;  %v1066_v63 = vadd.f32 %v1054_v62, %v956_v61  ;;  %v1060_v3 = vpop.f32.mrb[17].mxu1 }
 0x329   : > { %v1061_v40 = vpop.f32.mrb[18].mxu1 }
 0x32a   : > { %1070 = vst.msk [vmem:[%s1820_s12 + $0x8] sm:$0xff] %vm365_vm0, %v1066_v63  ;;  %v1063_v8 = vpop.f32.mrb[19].mxu1 }
 0x32b   : > { %v1009_v0 = vpop.f32.mrb[16].mxu0 }
 0x32c   : > { %v1059_v14 = vadd.f32 %v1058_v19, %v1009_v0  ;;  %v1011_v33 = vpop.f32.mrb[17].mxu0 }
 0x32d   : > { %v1012_v6 = vpop.f32.mrb[18].mxu0 }
 0x32e   : > { %v1067_v53 = vadd.f32 %v1059_v14, %v957_v9  ;;  %v1062_v18 = vadd.f32 %v1061_v40, %v1012_v6  ;;  %v1014_v35 = vpop.f32.mrb[19].mxu0 }
 0x330   : > { %1071 = vst.msk [vmem:[%s1820_s12 + $0x10] sm:$0xff] %vm365_vm0, %v1067_v53  ;;  %v1068_v20 = vadd.f32 %v1062_v18, %v958_v15 }
 0x332   : > { %1072 = vst.msk [vmem:[%s1820_s12 + $0x18] sm:$0xff] %vm365_vm0, %v1068_v20 }
 0x333 PF: > { %s21_s29 = sadd.s32 1, %s1478_s29   ;;  %s1887_s24 = smov %s1462_s25 }
 0x334   : > { %p18_p9 = scmp.ge.s32.totalorder %s21_s29, 4   ;;  %s1888_s25 = smov %s1466_s26 }
 0x335   : > { %s1889_s26 = smov %s1574_s13  ;;  %s1890_s27 = smov %s1474_s28 }
 0x336   : > { %s1891_s28 = smov %s1893_s8  ;;  %20 = sbr.rel (!%p18_p9) target bundleno = 4 (0x4), region = 100 }
 0x33d   :  { %1159 = vsyncpa [#allocation3], 1 }
 0x33e   :  { %1161 = vsyncpa [#allocation3 + $0x1], 1 }

// kernel: tpu_custom_call.1
= control target key start
LH: loop header
LB: loop body
LE: loop exit
PB: predicated region body
PF: predicated region fallthrough
CT: control target
= control target key end

     0   :  { %13 = vsyncpa [#allocation3], 0  ;;  %s1876_s0 = inlined_call_operand.hbm [shape: f32[2,16,512], index: 0, kind: input, shape index: {}]   ;;  %s1877_s1 = inlined_call_operand.vmem [shape: bf16[16,16], index: 1, kind: input, shape index: {}]   ;;  %s1878_s2 = inlined_call_operand.vmem [shape: f32[16,1], index: 2, kind: input, shape index: {}]   ;;  %s1879_s3 = inlined_call_operand.vmem [shape: bf16[32,16], index: 3, kind: input, shape index: {}]   ;;  %s1880_s4 = inlined_call_operand.vmem [shape: f32[32,1], index: 4, kind: input, shape index: {}]   ;;  %s1881_s5 = inlined_call_operand.vmem [shape: f32[32,1], index: 5, kind: input, shape index: {}]   ;;  %s1882_s6 = inlined_call_operand.vmem [shape: f32[1,2,32,16], index: 6, kind: output, shape index: {0}]   ;;  %s1883_s7 = inlined_call_operand.vmem [shape: f32[1,2,32,1], index: 7, kind: output, shape index: {1}]  }
   0x1   :  { %15 = vsyncpa [#allocation3 + $0x1], 0  ;;  %s1525_s24 = smov 0   ;;  %s1527_s25 = smov 0  }
   0x2   :  { %s1529_s26 = smov 0   ;;  %s1531_s27 = smov 0  }
   0x3   :  { %s1533_s28 = smov 0   ;;  %s1535_s29 = smov 0  }
   0x4 LB: > { %s1261_s30 = sadd.s32 4294967295, %s1478_s29   ;;  %s36_s8 = sadd.s32 1, %s1474_s28  ;;  %s1478_s29 = sphi %s1535_s29, %s21_s29   ;;  %s1474_s28 = sphi %s1533_s28, %s1891_s28   ;;  %s1470_s27 = sphi %s1531_s27, %s1890_s27   ;;  %s1466_s26 = sphi %s1529_s26, %s1889_s26   ;;  %s1462_s25 = sphi %s1527_s25, %s1888_s25   ;;  %s1458_s24 = sphi %s1525_s24, %s1887_s24  }
   0x5   : > { %p38_p0 = scmp.ge.s32.totalorder %s36_s8, 2  ;;  %s51_s9 = sadd.s32 1, %s1466_s26 }
   0x6   : > { %p58_p1 = scmp.ne.s32.totalorder %s1466_s26, %s1462_s25  ;;  %p59_p2 = scmp.eq.s32.totalorder %s1478_s29, 0 }
   0x7   : > { %s1893_s8 = smov (%p38_p0, %s36_s8), 0  ;;  %p64_p4 = scmp.ne.s32.totalorder %s1462_s25, %s1458_s24 }
   0x8   : > { %p1561_p3 = por %p59_p2, %p58_p1  ;;  %s46_s11 = ssub.s32 %s1474_s28, %s1893_s8 }
   0x9   : > { %p65_p5 = scmp.eq.s32.totalorder %s1261_s30, 0  ;;  %p49_p6 = scmp.eq.s32.totalorder %s46_s11, 0 }
   0xa   : > { %p1300_p8 = scmp.lt.s32.totalorder %s1478_s29, 2  ;;  %s264_s14 = sand.u32 1, %s1466_s26  }
   0xb   : > { %p1568_p7 = por %p65_p5, %p64_p4  ;;  %s1291_s15 = sshll.u32 %s1474_s28, 10 }
   0xc   : > { %s1574_s13 = scalar_select %p49_p6, %s1466_s26, %s51_s9  }
   0xd   : > { %s1265_s16 = sshll.u32 %s264_s14, 6  ;;  %s1581_s19 = scalar_lea.hbm %s1876_s0, %s1291_s15 }
   0xe   : > { %s268_s20 = scalar_lea.vmem [#allocation2], %s1265_s16  ;;  %p1585_p9 = pnand %p1300_p8, %p1561_p3 }
   0xf   : > { %s278_s21 = sshll.u32 %s268_s20, 4  ;;  %s1591_s23 = scalar_lea.sflag [#allocation3], %s264_s14  ;;  %s1589_s21 = int_to_ptr.vmem [resolvable:$true] %s278_s21 }
  0x10   : > { %s1398_s24 = scalar_lea.hbm %s1581_s19, 1024  ;;  %p1400_p11 = pneg %p1585_p9 }
  0x11   : > { %p1399_p10 = scmp.ne.s32.totalorder %s1581_s19, %s1398_s24  ;;  %s1403_s10 = scalar_lea.hbm %s1876_s0, 2048 }
  0x12   : > { %p1404_p0 = scmp.lt.u32.totalorder %s1581_s19, %s1876_s0  ;;  %p1405_p1 = scmp.lt.u32.totalorder %s1403_s10, %s1398_s24 }
  0x13   : > { %p1401_p12 = pnand %p1400_p11, %p1399_p10  ;;  %p1407_p3 = scmp.lt.u32.totalorder %s1398_s24, %s1581_s19 }
  0x14   : > { %p1406_p2 = por %p1405_p1, %p1404_p0 }
  0x15   : > { %p1402_p13 = pneg %p1401_p12 }
  0x16   : > { %p1408_p4 = por %p1407_p3, %p1406_p2 }
  0x18   : > { %p1409_p5 = pnand %p1408_p4, %p1402_p13 }
  0x1a   : > { %1412 = shalt.err (!%p1409_p5)
}
  0x1b   : > { %s1413_s14 = scalar_lea.vmem %s1589_s21, 1024  ;;  %s1480_s16 = smov [#allocation2]  }
  0x1c   : > { %p1414_p6 = scmp.ne.s32.totalorder %s1589_s21, %s1413_s14  ;;  %s1418_s17 = sshll.u32 %s1480_s16, 4  ;;  %s1419_s17 = int_to_ptr.vmem [resolvable:$false] %s1418_s17 }
  0x1d   : > { %s1420_s18 = scalar_lea.vmem %s1419_s17, 2048  ;;  %p1421_p12 = scmp.lt.s32.totalorder %s1589_s21, %s1419_s17 }
  0x1e   : > { %p1416_p8 = pnand %p1414_p6, %p1400_p11  ;;  %p1422_p0 = scmp.lt.s32.totalorder %s1420_s18, %s1413_s14 }
  0x20   : > { %p1417_p10 = pneg %p1416_p8  ;;  %p1423_p1 = por %p1422_p0, %p1421_p12 }
  0x22   : > { %p1424_p2 = pnand %p1423_p1, %p1417_p10 }
  0x24   : > { %1427 = shalt.err (!%p1424_p2)
}
  0x25   : > { %s1481_s20 = smov 512   ;;  %s1482_s24 = smov 32  }
  0x26   : > { %1299 = dma.hbm_to_vmem [thread:$0]  (!%p1585_p9), %s1581_s19, 1024, %s1589_s21, %s1591_s23, %s1481_s20, %s1481_s20, %s1482_s24  }
  0x27   : > { %p1268_p11 = scmp.ge.s32.totalorder %s1478_s29, 1  ;;  %p286_p13 = scmp.lt.s32.totalorder %s1478_s29, 3 }
  0x29   : > { %p287_p3 = pnand %p1268_p11, %p286_p13 }
  0x2a   : > { %s292_s30 = sand.u32 (!%p287_p3), 1, %s1462_s25  }
  0x2b   : > { %290 = sbr.rel (%p287_p3) target bundleno = 819 (0x333), region = 44  ;;  %s1269_s9 = sshll.u32 (!%p287_p3), %s292_s30, 6 }
  0x2c   : > { %s293_s10 = scalar_lea.sflag (!%p287_p3), [#allocation3], %s292_s30  ;;  %s296_s11 = scalar_lea.vmem (!%p287_p3), [#allocation2], %s1269_s9 }
  0x32   : > { %1453 = dma.done.wait (%p1568_p7), %s293_s10, 1024  }
  0x33   : > { %1455 = vsyncadd (%p1568_p7), %s293_s10, 4294966272  ;;  %v1483_v0 = vmov 0   ;;  %v376_v1 = vld [vmem:[%s296_s11 + $0x8] sm:$0xff]  ;;  %v378_v3 = vld [vmem:[%s296_s11 + $0x18] sm:$0xff]  ;;  %vm365_vm0 = vcmask 130048   ;;  %p344_p7 = scmp.lt.s32.totalorder %s1470_s27, 1 }
  0x34   : > { %442 = vmatprep.mubr.bf16.mxu0 %v1483_v0  ;;  %485 = vmatprep.mubr.bf16.mxu1 %v1483_v0  ;;  %v380_v2 = vld [vmem:[%s296_s11 + $0x28] sm:$0xff]  ;;  %v382_v5 = vld [vmem:[%s296_s11 + $0x38] sm:$0xff]  ;;  %v375_v6 = vld [vmem:[%s296_s11] sm:$0xff]  ;;  %vm370_vm1 = vcmask 7168  }
  0x35   : > { %1353 = vset.pattern.permute.xlu0 %v1483_v0  ;;  %1354 = vset.pattern.permute.xlu1 %v1483_v0  ;;  %v386_v4 = vpack.c.bf16 %v380_v2, %v376_v1  ;;  %v379_v7 = vld [vmem:[%s296_s11 + $0x20] sm:$0xff]  ;;  %v388_v8 = vpack.c.bf16 %v382_v5, %v378_v3  ;;  %v377_v10 = vld [vmem:[%s296_s11 + $0x10] sm:$0xff]  ;;  %v390_v15 = vld [vmem:[%s1878_s2 + $0x8] sm:$0xff]  ;;  %s1895_s27 = smov (!%p344_p7, %s1470_s27), 1 }
  0x36   : > { %v385_v9 = vpack.c.bf16 %v379_v7, %v375_v6  ;;  %v381_v11 = vld [vmem:[%s296_s11 + $0x30] sm:$0xff]  ;;  %v1355_v13 = vld [vmem:[%s1877_s1] sm:$0xff]   ;;  %v671_v17 = vld [vmem:[%s1881_s5 + $0x8] sm:$0xff]  ;;  %s1292_s20 = sshll.u32 %s1895_s27, 5 }
  0x37   : > { %410 = vmatprep.subr.bf16.mxu0 %v386_v4  ;;  %v387_v12 = vpack.c.bf16 %v381_v11, %v377_v10  ;;  %v389_v14 = vld [vmem:[%s1878_s2] sm:$0xff]  ;;  %453 = vmatprep.subr.bf16.mxu1 %v388_v8  ;;  %v708_v16 = vld [vmem:[%s1880_s4 + $0x10] sm:$0xff]  ;;  %v707_v20 = vld [vmem:[%s1880_s4 + $0x8] sm:$0xff]  ;;  %s1689_s9 = scalar_lea.vmem %s1883_s7, %s1292_s20  ;;  %s1820_s12 = scalar_lea.vmem %s1882_s6, %s1292_s20 }
  0x38   : > { %411 = vmatpush1.bf16.msra.mxu0 %v385_v9  ;;  %393 = vperm.xlu0 %1353, %v389_v14   ;;  %v672_v18 = vld [vmem:[%s1881_s5 + $0x10] sm:$0xff]  ;;  %v706_v19 = vld [vmem:[%s1880_s4] sm:$0xff]  ;;  %v709_v22 = vld [vmem:[%s1880_s4 + $0x18] sm:$0xff] }
  0x39   : > { %454 = vmatpush1.bf16.msra.mxu1 %v387_v12  ;;  %712 = vperm.xlu1 %1354, %v706_v19   ;;  %v670_v21 = vld [vmem:[%s1881_s5] sm:$0xff]  ;;  %v673_v23 = vld [vmem:[%s1881_s5 + $0x18] sm:$0xff]  ;;  %v1357_v4 = vld [vmem:[%s1879_s3 + $0x8] sm:$0xff]   ;;  %v1484_v12 = vmov 0.0  }
  0x3a   : > { %v1356_v2 = vld [vmem:[%s1879_s3] sm:$0xff]   ;;  %372 = vst.msk [vmem:[%s1689_s9 + $0x8] sm:$0xff] %vm370_vm1, %v1484_v12  ;;  %371 = vst.msk [vmem:[%s1689_s9] sm:$0xff] %vm370_vm1, %v1484_v12 }
  0x3b   : > { %1275 = vmatmul.mubr.msk.bf16.vlgmr.msra.gmra.mrb[0].mxu0 %vm365_vm0, %v1355_v13  ;;  %373 = vst.msk [vmem:[%s1689_s9 + $0x10] sm:$0xff] %vm370_vm1, %v1484_v12  ;;  %374 = vst.msk [vmem:[%s1689_s9 + $0x18] sm:$0xff] %vm370_vm1, %v1484_v12 }
  0x3c   : > { %1276 = vmatmul.mubr.msk.bf16.vlgmr.msra.gmra.mrb[0].mxu1 %vm365_vm0, %v1355_v13  ;;  %560 = vmatprep.mubr.bf16.mxu0 %v1483_v0  ;;  %366 = vst.msk [vmem:[%s1820_s12] sm:$0xff] %vm365_vm0, %v1484_v12  ;;  %367 = vst.msk [vmem:[%s1820_s12 + $0x8] sm:$0xff] %vm365_vm0, %v1484_v12 }
  0x3d   : > { %398 = vperm.xlu0 %1353, %v390_v15   ;;  %613 = vmatprep.mubr.bf16.mxu1 %v1483_v0  ;;  %368 = vst.msk [vmem:[%s1820_s12 + $0x10] sm:$0xff] %vm365_vm0, %v1484_v12  ;;  %369 = vst.msk [vmem:[%s1820_s12 + $0x18] sm:$0xff] %vm365_vm0, %v1484_v12 }
  0x3e   : > { %717 = vperm.xlu1 %1354, %v707_v20  }
  0x41   : > { %722 = vperm.xlu0 %1353, %v708_v16  }
  0x42   : > { %748 = vperm.xlu1 %1354, %v670_v21  }
  0x45   : > { %753 = vperm.xlu0 %1353, %v671_v17  }
  0x46   : > { %727 = vperm.xlu1 %1354, %v709_v22  }
  0x49   : > { %758 = vperm.xlu0 %1353, %v672_v18  }
  0x4a   : > { %763 = vperm.xlu1 %1354, %v673_v23  }
  0xb7   : > { %v394_v24 = vpop.permute.xlu0 %393 }
  0xb8   : > { %v713_v20 = vpop.permute.xlu1 %712 }
  0xbc   : > { %v399_v25 = vpop.permute.xlu0 %398 }
 0x10e   : > { %v444_v26 = vpop.f32.mrb[0].mxu0 }
 0x10f   : > { %v445_v27 = vadd.f32 %v444_v26, %v394_v24  ;;  %v487_v28 = vpop.f32.mrb[0].mxu1  ;;  %v446_v29 = vpop.f32.mrb[1].mxu0 }
 0x110   : > { %v488_v30 = vadd.f32 %v487_v28, %v394_v24  ;;  %v447_v31 = vadd.f32 %v446_v29, %v394_v24  ;;  %v489_v32 = vpop.f32.mrb[1].mxu1  ;;  %v448_v33 = vpop.f32.mrb[2].mxu0 }
 0x111   : > { %v496_v34 = vmax.f32 %v445_v27, 0.0  ;;  %v490_v35 = vadd.f32 %v489_v32, %v394_v24  ;;  %v449_v36 = vadd.f32 %v448_v33, %v399_v25  ;;  %v491_v37 = vpop.f32.mrb[2].mxu1  ;;  %v450_v38 = vpop.f32.mrb[3].mxu0 }
 0x112   : > { %v498_v39 = vmax.f32 %v488_v30, 0.0  ;;  %v497_v40 = vmax.f32 %v447_v31, 0.0  ;;  %v492_v41 = vadd.f32 %v491_v37, %v399_v25  ;;  %v451_v42 = vadd.f32 %v450_v38, %v399_v25  ;;  %v493_v43 = vpop.f32.mrb[3].mxu1  ;;  %v718_v27 = vpop.permute.xlu1 %717 }
 0x113   : > { %v499_v44 = vmax.f32 %v490_v35, 0.0  ;;  %v500_v45 = vmax.f32 %v449_v36, 0.0  ;;  %v494_v46 = vadd.f32 %v493_v43, %v399_v25  ;;  %v634_v47 = vmul.f32 %v496_v34, %v496_v34  ;;  %v1703_v25 = vpop.permute.xlu0 %722 }
 0x114   : > { %v636_v48 = vmul.f32 %v498_v39, %v498_v39  ;;  %v502_v49 = vmax.f32 %v492_v41, 0.0  ;;  %v501_v50 = vmax.f32 %v451_v42, 0.0  ;;  %v635_v51 = vmul.f32 %v497_v40, %v497_v40 }
 0x115   : > { %v504_v52 = vpack.c.bf16 %v500_v45, %v496_v34  ;;  %v638_v53 = vmul.f32 %v500_v45, %v500_v45  ;;  %v503_v54 = vmax.f32 %v494_v46, 0.0  ;;  %v637_v59 = vmul.f32 %v499_v44, %v499_v44 }
 0x116   : > { %v506_v55 = vpack.c.bf16 %v502_v49, %v498_v39  ;;  %v640_v56 = vmul.f32 %v502_v49, %v502_v49  ;;  %v505_v57 = vpack.c.bf16 %v501_v50, %v497_v40  ;;  %v639_v58 = vmul.f32 %v501_v50, %v501_v50 }
 0x117   : > { %v642_v60 = vadd.f32 %v638_v53, %v634_v47  ;;  %v507_v61 = vpack.c.bf16 %v503_v54, %v499_v44  ;;  %v641_v62 = vmul.f32 %v503_v54, %v503_v54  ;;  %v749_v54 = vpop.permute.xlu1 %748 }
 0x118   : > { %v656_v63 = vadd.f32 %v640_v56, %v636_v48  ;;  %v649_v1 = vadd.f32 %v639_v58, %v635_v51  ;;  %528 = vmatprep.subr.bf16.mxu0 %v505_v57 }
 0x119   : > { %v663_v3 = vadd.f32 %v641_v62, %v637_v59  ;;  %581 = vmatprep.subr.bf16.mxu1 %v507_v61  ;;  %529 = vmatpush1.bf16.msra.mxu0 %v504_v52  ;;  %v643_v5 = vrot.slane %v642_v60, 4 }
 0x11a   : > { %582 = vmatpush1.bf16.msra.mxu1 %v506_v55  ;;  %967 = vmatprep.subr.bf16.mxu0 %v505_v57  ;;  %v657_v6 = vrot.slane %v656_v63, 4  ;;  %v650_v7 = vrot.slane %v649_v1, 4 }
 0x11b   : > { %1016 = vmatprep.subr.bf16.mxu1 %v507_v61  ;;  %v664_v8 = vrot.slane %v663_v3, 4 }
 0x11c   : > { %1279 = vmatmul.mubr.msk.bf16.vlgmr.msra.gmra.mrb[4].mxu0 %vm365_vm0, %v1356_v2  ;;  %v658_v9 = vadd.f32 %v657_v6, %v656_v63  ;;  %v651_v10 = vadd.f32 %v650_v7, %v649_v1  ;;  %v754_v63 = vpop.permute.xlu0 %753 }
 0x11d   : > { %1281 = vmatmul.mubr.msk.bf16.vlgmr.msra.gmra.mrb[4].mxu1 %vm365_vm0, %v1356_v2  ;;  %570 = vmatprep.mubr.bf16.mxu0 %v1483_v0  ;;  %v665_v11 = vadd.f32 %v664_v8, %v663_v3 }
 0x11e   : > { %623 = vmatprep.mubr.bf16.mxu1 %v1483_v0  ;;  %v644_v0 = vadd.f32 %v643_v5, %v642_v60  ;;  %v659_v14 = vrot.slane %v658_v9, 2  ;;  %v652_v15 = vrot.slane %v651_v10, 2 }
 0x11f   : > { %v666_v16 = vrot.slane %v665_v11, 2 }
 0x120   : > { %v645_v13 = vrot.slane %v644_v0, 2  ;;  %v660_v18 = vadd.f32 %v659_v14, %v658_v9  ;;  %v653_v19 = vadd.f32 %v652_v15, %v651_v10 }
 0x121   : > { %v667_v21 = vadd.f32 %v666_v16, %v665_v11 }
 0x122   : > { %968 = vmatpush1.bf16.xpose.msra.mxu0 %v504_v52  ;;  %v646_v17 = vadd.f32 %v645_v13, %v644_v0  ;;  %v661_v23 = vrot.slane %v660_v18, 1  ;;  %v654_v24 = vrot.slane %v653_v19, 1 }
 0x123   : > { %1017 = vmatpush1.bf16.xpose.msra.mxu1 %v506_v55  ;;  %v668_v26 = vrot.slane %v667_v21, 1 }
 0x124   : > { %1280 = vmatmul.mubr.msk.bf16.gmra.mrb[8].mxu0 %vm365_vm0, %v1357_v4  ;;  %v647_v22 = vrot.slane %v646_v17, 1  ;;  %v1707_v33 = vadd.f32 %v661_v23, %v660_v18  ;;  %v1709_v35 = vadd.f32 %v654_v24, %v653_v19  ;;  %v728_v24 = vpop.permute.xlu1 %727 }
 0x125   : > { %1282 = vmatmul.mubr.msk.bf16.gmra.mrb[8].mxu1 %vm365_vm0, %v1357_v4  ;;  %v1712_v40 = vadd.f32 %v668_v26, %v667_v21 }
 0x126   : > { %v1705_v29 = vadd.f32 %v647_v22, %v646_v17 }
 0x1ef   : > { %v562_v28 = vpop.f32.mrb[4].mxu0 }
 0x1f0   : > { %v674_v30 = vmul.f32 2.0, %v562_v28  ;;  %v615_v31 = vpop.f32.mrb[4].mxu1  ;;  %v564_v32 = vpop.f32.mrb[5].mxu0 }
 0x1f1   : > { %v676_v34 = vmul.f32 2.0, %v615_v31  ;;  %v675_v36 = vmul.f32 2.0, %v564_v32  ;;  %v617_v37 = vpop.f32.mrb[5].mxu1  ;;  %v566_v38 = vpop.f32.mrb[6].mxu0 }
 0x1f2   : > { %v690_v39 = vsub.f32 %v1705_v29, %v674_v30  ;;  %v677_v41 = vmul.f32 2.0, %v617_v37  ;;  %v678_v42 = vmul.f32 2.0, %v566_v38  ;;  %v619_v43 = vpop.f32.mrb[6].mxu1  ;;  %v568_v44 = vpop.f32.mrb[7].mxu0 }
 0x1f3   : > { %v692_v45 = vsub.f32 %v1707_v33, %v676_v34  ;;  %v691_v46 = vsub.f32 %v1709_v35, %v675_v36  ;;  %v680_v47 = vmul.f32 2.0, %v619_v43  ;;  %v679_v48 = vmul.f32 2.0, %v568_v44  ;;  %v621_v49 = vpop.f32.mrb[7].mxu1  ;;  %v759_v38 = vpop.permute.xlu0 %758 }
 0x1f4   : > { %v730_v50 = vadd.f32 %v713_v20, %v690_v39  ;;  %v693_v51 = vsub.f32 %v1712_v40, %v677_v41  ;;  %v694_v52 = vsub.f32 %v1705_v29, %v678_v42  ;;  %v681_v53 = vmul.f32 2.0, %v621_v49 }
 0x1f5   : > { %v732_v55 = vadd.f32 %v713_v20, %v692_v45  ;;  %v731_v56 = vadd.f32 %v713_v20, %v691_v46  ;;  %v696_v57 = vsub.f32 %v1707_v33, %v680_v47  ;;  %v695_v58 = vsub.f32 %v1709_v35, %v679_v48 }
 0x1f6   : > { %v1720_v59 = vmul.f32 %v749_v54, %v730_v50  ;;  %v733_v60 = vadd.f32 %v713_v20, %v693_v51  ;;  %v734_v61 = vadd.f32 %v718_v27, %v694_v52  ;;  %v697_v62 = vsub.f32 %v1712_v40, %v681_v53 }
 0x1f7   : > { %v1723_v1 = vmul.f32 %v749_v54, %v732_v55  ;;  %v1725_v2 = vmul.f32 %v749_v54, %v731_v56  ;;  %v736_v3 = vadd.f32 %v718_v27, %v696_v57  ;;  %v735_v4 = vadd.f32 %v718_v27, %v695_v58  ;;  %v572_v5 = vpop.f32.mrb[8].mxu0  ;;  %v764_v56 = vpop.permute.xlu1 %763 }
 0x1f8   : > { %v1727_v6 = vmul.f32 %v749_v54, %v733_v60  ;;  %v1729_v7 = vmul.f32 %v754_v63, %v734_v61  ;;  %v737_v8 = vadd.f32 %v718_v27, %v697_v62  ;;  %v682_v0 = vmul.f32 2.0, %v572_v5  ;;  %v625_v9 = vpop.f32.mrb[8].mxu1  ;;  %v574_v10 = vpop.f32.mrb[9].mxu0 }
 0x1f9   : > { %v1731_v11 = vmul.f32 %v754_v63, %v736_v3  ;;  %v1733_v13 = vmul.f32 %v754_v63, %v735_v4  ;;  %v684_v14 = vmul.f32 2.0, %v625_v9  ;;  %v683_v15 = vmul.f32 2.0, %v574_v10  ;;  %v627_v16 = vpop.f32.mrb[9].mxu1  ;;  %v576_v17 = vpop.f32.mrb[10].mxu0 }
 0x1fa   : > { %v782_v18 = vmax.f32 %v1720_v59, %v1729_v7  ;;  %v1737_v19 = vmul.f32 %v754_v63, %v737_v8  ;;  %v698_v20 = vsub.f32 %v1705_v29, %v682_v0  ;;  %v685_v21 = vmul.f32 2.0, %v627_v16  ;;  %v629_v22 = vpop.f32.mrb[10].mxu1  ;;  %v578_v23 = vpop.f32.mrb[11].mxu0 }
 0x1fb   : > { %v800_v26 = vmax.f32 %v1723_v1, %v1731_v11  ;;  %v791_v27 = vmax.f32 %v1725_v2, %v1733_v13  ;;  %v700_v28 = vsub.f32 %v1707_v33, %v684_v14  ;;  %v699_v30 = vsub.f32 %v1709_v35, %v683_v15  ;;  %v631_v31 = vpop.f32.mrb[11].mxu1 }
 0x1fc   : > { %v809_v32 = vmax.f32 %v1727_v6, %v1737_v19  ;;  %v738_v34 = vadd.f32 %v1703_v25, %v698_v20  ;;  %v701_v36 = vsub.f32 %v1712_v40, %v685_v21  ;;  %v686_v37 = vmul.f32 2.0, %v576_v17 }
 0x1fd   : > { %v740_v39 = vadd.f32 %v1703_v25, %v700_v28  ;;  %v739_v41 = vadd.f32 %v1703_v25, %v699_v30  ;;  %v688_v42 = vmul.f32 2.0, %v629_v22  ;;  %v687_v43 = vmul.f32 2.0, %v578_v23 }
 0x1fe   : > { %v774_v44 = vmul.f32 %v759_v38, %v738_v34  ;;  %v741_v45 = vadd.f32 %v1703_v25, %v701_v36  ;;  %v702_v46 = vsub.f32 %v1705_v29, %v686_v37  ;;  %v689_v47 = vmul.f32 2.0, %v631_v31 }
 0x1ff   : > { %v1754_v48 = vmul.f32 %v759_v38, %v740_v39  ;;  %v1756_v49 = vmul.f32 %v759_v38, %v739_v41  ;;  %v704_v50 = vsub.f32 %v1707_v33, %v688_v42  ;;  %v703_v51 = vsub.f32 %v1709_v35, %v687_v43 }
 0x200   : > { %v783_v52 = vmax.f32 %v782_v18, %v774_v44  ;;  %v1760_v53 = vmul.f32 %v759_v38, %v741_v45  ;;  %v742_v54 = vadd.f32 %v728_v24, %v702_v46  ;;  %v705_v55 = vsub.f32 %v1712_v40, %v689_v47 }
 0x201   : > { %v801_v25 = vmax.f32 %v800_v26, %v1754_v48  ;;  %v792_v29 = vmax.f32 %v791_v27, %v1756_v49  ;;  %v744_v57 = vadd.f32 %v728_v24, %v704_v50  ;;  %v743_v58 = vadd.f32 %v728_v24, %v703_v51 }
 0x202   : > { %v810_v60 = vmax.f32 %v809_v32, %v1760_v53  ;;  %v778_v61 = vmul.f32 %v764_v56, %v742_v54  ;;  %v745_v62 = vadd.f32 %v728_v24, %v705_v55 }
 0x203   : > { %v780_v33 = vmul.f32 %v764_v56, %v744_v57  ;;  %v1766_v63 = vmul.f32 %v764_v56, %v743_v58 }
 0x204   : > { %v784_v35 = vmax.f32 %v783_v52, %v778_v61  ;;  %v1768_v3 = vmul.f32 %v764_v56, %v745_v62 }
 0x205   : > { %v802_v4 = vmax.f32 %v801_v25, %v780_v33  ;;  %v793_v40 = vmax.f32 %v792_v29, %v1766_v63 }
 0x206   : > { %v785_v5 = vrot.slane %v784_v35, 4  ;;  %v811_v8 = vmax.f32 %v810_v60, %v1768_v3 }
 0x207   : > { %v803_v0 = vrot.slane %v802_v4, 4  ;;  %v794_v9 = vrot.slane %v793_v40, 4 }
 0x208   : > { %v786_v10 = vmax.f32 %v784_v35, %v785_v5  ;;  %v812_v14 = vrot.slane %v811_v8, 4 }
 0x209   : > { %v804_v15 = vmax.f32 %v802_v4, %v803_v0  ;;  %v795_v16 = vmax.f32 %v793_v40, %v794_v9 }
 0x20a   : > { %v787_v17 = vrot.slane %v786_v10, 2  ;;  %v813_v18 = vmax.f32 %v811_v8, %v812_v14 }
 0x20b   : > { %v805_v20 = vrot.slane %v804_v15, 2  ;;  %v796_v21 = vrot.slane %v795_v16, 2 }
 0x20c   : > { %v788_v22 = vmax.f32 %v786_v10, %v787_v17  ;;  %v814_v23 = vrot.slane %v813_v18, 2 }
 0x20d   : > { %v806_v24 = vmax.f32 %v804_v15, %v805_v20  ;;  %v797_v26 = vmax.f32 %v795_v16, %v796_v21 }
 0x20e   : > { %v789_v27 = vrot.slane %v788_v22, 1  ;;  %v815_v28 = vmax.f32 %v813_v18, %v814_v23 }
 0x20f   : > { %v807_v30 = vrot.slane %v806_v24, 1  ;;  %v798_v31 = vrot.slane %v797_v26, 1 }
 0x210   : > { %v790_v32 = vmax.f32 %v788_v22, %v789_v27  ;;  %v816_v37 = vrot.slane %v815_v28, 1 }
 0x211   : > { %v808_v34 = vmax.f32 %v806_v24, %v807_v30  ;;  %v799_v36 = vmax.f32 %v797_v26, %v798_v31 }
 0x212   : > { %v818_v38 = vsub.f32 %v1720_v59, %v790_v32  ;;  %v822_v39 = vsub.f32 %v1729_v7, %v790_v32  ;;  %v826_v41 = vsub.f32 %v774_v44, %v790_v32  ;;  %v830_v42 = vsub.f32 %v778_v61, %v790_v32 }
 0x213   : > { %v820_v43 = vsub.f32 %v1723_v1, %v808_v34  ;;  %v824_v45 = vsub.f32 %v1731_v11, %v808_v34  ;;  %v828_v46 = vsub.f32 %v1754_v48, %v808_v34  ;;  %v832_v47 = vsub.f32 %v780_v33, %v808_v34 }
 0x214   : > { %v834_v50 = vmul.f32 1.442695, %v818_v38  ;;  %v842_v51 = vmul.f32 1.442695, %v822_v39  ;;  %v850_v52 = vmul.f32 1.442695, %v826_v41  ;;  %v827_v54 = vsub.f32 %v1756_v49, %v799_v36 }
 0x215   : > { %v858_v55 = vmul.f32 1.442695, %v830_v42  ;;  %v831_v56 = vsub.f32 %v1766_v63, %v799_v36  ;;  %v838_v59 = vmul.f32 1.442695, %v820_v43  ;;  %v846_v7 = vmul.f32 1.442695, %v824_v45 }
 0x216   : > { %1358 = vpow2.f32 %v834_v50  ;;  %v817_v44 = vmax.f32 %v815_v28, %v816_v37  ;;  %v819_v1 = vsub.f32 %v1725_v2, %v799_v36  ;;  %v854_v11 = vmul.f32 1.442695, %v828_v46 }
 0x217   : > { %1360 = vpow2.f32 %v842_v51  ;;  %v823_v48 = vsub.f32 %v1733_v13, %v799_v36  ;;  %v862_v58 = vmul.f32 1.442695, %v832_v47  ;;  %v860_v8 = vmul.f32 1.442695, %v831_v56 }
 0x218   : > { %1362 = vpow2.f32 %v850_v52  ;;  %v821_v25 = vsub.f32 %v1727_v6, %v817_v44  ;;  %v825_v29 = vsub.f32 %v1737_v19, %v817_v44  ;;  %v829_v49 = vsub.f32 %v1760_v53, %v817_v44 }
 0x219   : > { %1364 = vpow2.f32 %v858_v55  ;;  %v833_v57 = vsub.f32 %v1768_v3, %v817_v44  ;;  %v836_v13 = vmul.f32 1.442695, %v819_v1  ;;  %v844_v19 = vmul.f32 1.442695, %v823_v48 }
 0x21a   : > { %1366 = vpow2.f32 %v838_v59  ;;  %v840_v60 = vmul.f32 1.442695, %v821_v25  ;;  %v848_v61 = vmul.f32 1.442695, %v825_v29  ;;  %v856_v2 = vmul.f32 1.442695, %v829_v49 }
 0x21b   : > { %1368 = vpow2.f32 %v846_v7  ;;  %v864_v62 = vmul.f32 1.442695, %v833_v57  ;;  %v852_v3 = vmul.f32 1.442695, %v827_v54 }
 0x21c   : > { %1370 = vpow2.f32 %v854_v11  ;;  %v925_v11 = vlaneseq }
 0x21d   : > { %1372 = vpow2.f32 %v862_v58 }
 0x21e   : > { %1374 = vpow2.f32 %v840_v60  ;;  %v926_v57 = vand.u32 127, %v925_v11 }
 0x21f   : > { %1376 = vpow2.f32 %v848_v61 }
 0x220   : > { %v1785_v33 = vpop.eup %1358  ;;  %1378 = vpow2.f32 %v856_v2 }
 0x221   : > { %v1787_v6 = vpop.eup %1360  ;;  %1380 = vpow2.f32 %v864_v62 }
 0x222   : > { %v1789_v53 = vpop.eup %1362  ;;  %v866_v63 = vadd.f32 %v1787_v6, %v1785_v33  ;;  %1382 = vpow2.f32 %v836_v13 }
 0x223   : > { %v1793_v35 = vpop.eup %1364  ;;  %1384 = vpow2.f32 %v844_v19 }
 0x224   : > { %v1795_v4 = vpop.eup %1366  ;;  %v867_v40 = vadd.f32 %v1789_v53, %v866_v63  ;;  %1386 = vpow2.f32 %v852_v3  ;;  %v929_v3 = vadd.s32 384, %v926_v57 }
 0x225   : > { %v1798_v5 = vpop.eup %1368  ;;  %1388 = vpow2.f32 %v860_v8 }
 0x226   : > { %v868_v0 = vadd.f32 %v1793_v35, %v867_v40  ;;  %v884_v9 = vadd.f32 %v1798_v5, %v1795_v4  ;;  %v1371_v10 = vpop.eup %1370  ;;  %vm938_vm2 = vcmp.lt.s32.totalorder %v929_v3, 400 }
 0x227   : > { %v1373_v16 = vpop.eup %1372  ;;  %vm1283_vm3 = vmpackc.low %vm938_vm2, %vm938_vm2 }
 0x228   : > { %v869_v14 = vrot.slane %v868_v0, 4  ;;  %v885_v15 = vadd.f32 %v1371_v10, %v884_v9  ;;  %v1375_v17 = vpop.eup %1374 }
 0x229   : > { %v1377_v21 = vpop.eup %1376 }
 0x22a   : > { %v870_v18 = vadd.f32 %v869_v14, %v868_v0  ;;  %v886_v20 = vadd.f32 %v1373_v16, %v885_v15  ;;  %v1379_v22 = vpop.eup %1378  ;;  %v893_v26 = vadd.f32 %v1377_v21, %v1375_v17 }
 0x22b   : > { %v1381_v27 = vpop.eup %1380 }
 0x22c   : > { %v871_v23 = vrot.slane %v870_v18, 2  ;;  %v887_v24 = vrot.slane %v886_v20, 4  ;;  %v1383_v28 = vpop.eup %1382  ;;  %v894_v32 = vadd.f32 %v1379_v22, %v893_v26 }
 0x22d   : > { %v1385_v34 = vpop.eup %1384 }
 0x22e   : > { %v872_v30 = vadd.f32 %v871_v23, %v870_v18  ;;  %v888_v31 = vadd.f32 %v887_v24, %v886_v20  ;;  %v895_v38 = vadd.f32 %v1381_v27, %v894_v32  ;;  %v875_v39 = vadd.f32 %v1385_v34, %v1383_v28  ;;  %v1387_v41 = vpop.eup %1386 }
 0x22f   : > { %v1389_v47 = vpop.eup %1388 }
 0x230   : > { %v873_v36 = vrot.slane %v872_v30, 1  ;;  %v889_v37 = vrot.slane %v888_v31, 2  ;;  %v896_v45 = vrot.slane %v895_v38, 4  ;;  %v876_v46 = vadd.f32 %v1387_v41, %v875_v39 }
 0x232   : > { %v874_v42 = vadd.f32 %v873_v36, %v872_v30  ;;  %v890_v43 = vadd.f32 %v889_v37, %v888_v31  ;;  %v897_v51 = vadd.f32 %v896_v45, %v895_v38  ;;  %v877_v52 = vadd.f32 %v1389_v47, %v876_v46  ;;  %v1074_v46 = vld [vmem:[%s1689_s9 + $0x8] sm:$0xff] }
 0x234   : > { %1390 = vrcp.f32 %v874_v42  ;;  %v891_v50 = vrot.slane %v890_v43, 1  ;;  %v898_v55 = vrot.slane %v897_v51, 2  ;;  %v878_v56 = vrot.slane %v877_v52, 4 }
 0x236   : > { %v892_v54 = vadd.f32 %v891_v50, %v890_v43  ;;  %v899_v59 = vadd.f32 %v898_v55, %v897_v51  ;;  %v879_v7 = vadd.f32 %v878_v56, %v877_v52  ;;  %v1075_v55 = vld [vmem:[%s1689_s9 + $0x10] sm:$0xff] }
 0x238   : > { %1392 = vrcp.f32 %v892_v54  ;;  %v900_v44 = vrot.slane %v899_v59, 1  ;;  %v880_v1 = vrot.slane %v879_v7, 2 }
 0x23a   : > { %v901_v48 = vadd.f32 %v900_v44, %v899_v59  ;;  %v881_v25 = vadd.f32 %v880_v1, %v879_v7  ;;  %v1076_v7 = vld [vmem:[%s1689_s9 + $0x18] sm:$0xff] }
 0x23c   : > { %1394 = vrcp.f32 %v901_v48  ;;  %v882_v49 = vrot.slane %v881_v25, 1 }
 0x23e   : > { %v1391_v29 = vpop.eup %1390  ;;  %v883_v62 = vadd.f32 %v882_v49, %v881_v25  ;;  %v955_v49 = vld [vmem:[%s1820_s12] sm:$0xff] }
 0x23f   : > { %v906_v58 = vmul.f32 %v1391_v29, %v1785_v33  ;;  %v910_v60 = vmul.f32 %v1391_v29, %v1787_v6  ;;  %v914_v61 = vmul.f32 %v1391_v29, %v1789_v53  ;;  %v918_v2 = vmul.f32 %v1391_v29, %v1793_v35 }
 0x240   : > { %1396 = vrcp.f32 %v883_v62 }
 0x241   : > { %v959_v13 = vpack.c.bf16 %v910_v60, %v906_v58  ;;  %v963_v19 = vpack.c.bf16 %v918_v2, %v914_v61 }
 0x242   : > { %v1393_v63 = vpop.eup %1392 }
 0x243   : > { %v908_v40 = vmul.f32 %v1393_v63, %v1795_v4  ;;  %v912_v8 = vmul.f32 %v1393_v63, %v1798_v5  ;;  %v916_v0 = vmul.f32 %v1393_v63, %v1371_v10  ;;  %v920_v9 = vmul.f32 %v1393_v63, %v1373_v16 }
 0x245   : > { %v961_v14 = vpack.c.bf16 %v912_v8, %v908_v40  ;;  %v965_v33 = vpack.c.bf16 %v920_v9, %v916_v0 }
 0x246   : > { %v1395_v6 = vpop.eup %1394 }
 0x247   : > { %v909_v15 = vmul.f32 %v1395_v6, %v1375_v17  ;;  %v913_v53 = vmul.f32 %v1395_v6, %v1377_v21  ;;  %v917_v18 = vmul.f32 %v1395_v6, %v1379_v22  ;;  %v921_v35 = vmul.f32 %v1395_v6, %v1381_v27 }
 0x249   : > { %v1284_v20 = vpack.c.bf16 %v913_v53, %v909_v15  ;;  %v1287_v23 = vpack.c.bf16 %v921_v35, %v917_v18  ;;  %v946_v36 = vsel %vm938_vm2, %v913_v53, 0.0  ;;  %v954_v42 = vsel %vm938_vm2, %v921_v35, 0.0 }
 0x24a   : > { %v1397_v24 = vpop.eup %1396 }
 0x24b   : > { %v907_v26 = vmul.f32 %v1397_v24, %v1383_v28  ;;  %v911_v4 = vmul.f32 %v1397_v24, %v1385_v34  ;;  %1285 = vmatprep.mubr.msk.bf16.mxu1 %vm1283_vm3, %v1284_v20  ;;  %v915_v5 = vmul.f32 %v1397_v24, %v1387_v41  ;;  %v919_v10 = vmul.f32 %v1397_v24, %v1389_v47  ;;  %v1073_v47 = vld [vmem:[%s1689_s9] sm:$0xff] }
 0x24c   : > { %1049 = vmatmul.mubr.bf16.vlgmr.msra.gmra.mrb[12].mxu1 %v961_v14  ;;  %v942_v28 = vsel %vm938_vm2, %v909_v15, 0.0  ;;  %v950_v41 = vsel %vm938_vm2, %v917_v18, 0.0  ;;  %v958_v15 = vld [vmem:[%s1820_s12 + $0x18] sm:$0xff] }
 0x24d   : > { %v960_v16 = vpack.c.bf16 %v911_v4, %v907_v26  ;;  %v964_v30 = vpack.c.bf16 %v919_v10, %v915_v5  ;;  %1288 = vmatprep.mubr.msk.bf16.mxu1 %vm1283_vm3, %v1287_v23  ;;  %v1082_v31 = vadd.f32 %v911_v4, %v910_v60  ;;  %v1077_v17 = vadd.f32 %v907_v26, %v906_v58 }
 0x24e   : > { %v1087_v21 = vadd.f32 %v915_v5, %v914_v61  ;;  %v1092_v22 = vadd.f32 %v919_v10, %v918_v2  ;;  %v956_v61 = vld [vmem:[%s1820_s12 + $0x8] sm:$0xff] }
 0x24f   : > { %999 = vmatprep.mubr.bf16.mxu0 %v960_v16  ;;  %v1083_v27 = vadd.f32 %v1082_v31, %v912_v8  ;;  %v1078_v32 = vadd.f32 %v1077_v17, %v908_v40 }
 0x250   : > { %1000 = vmatmul.mubr.bf16.vlgmr.msra.gmra.mrb[12].mxu0 %v959_v13  ;;  %v1088_v34 = vadd.f32 %v1087_v21, %v916_v0  ;;  %v1093_v37 = vadd.f32 %v1092_v22, %v920_v9  ;;  %v957_v9 = vld [vmem:[%s1820_s12 + $0x10] sm:$0xff] }
 0x251   : > { %1007 = vmatprep.mubr.bf16.mxu0 %v964_v30  ;;  %v1084_v38 = vadd.f32 %v1083_v27, %v946_v36  ;;  %v1079_v39 = vadd.f32 %v1078_v32, %v942_v28 }
 0x252   : > { %v1089_v43 = vadd.f32 %v1088_v34, %v950_v41  ;;  %v1094_v45 = vadd.f32 %v1093_v37, %v954_v42 }
 0x253   : > { %1085 = vadd.xlane.f32.xlu1 %v1084_v38  ;;  %1080 = vadd.xlane.f32.xlu0 %v1079_v39 }
 0x254   : > { %1057 = vmatmul.mubr.bf16.gmra.mrb[16].mxu1 %v965_v33 }
 0x257   : > { %1090 = vadd.xlane.f32.xlu0 %v1089_v43 }
 0x258   : > { %1008 = vmatmul.mubr.bf16.gmra.mrb[16].mxu0 %v963_v19 }
 0x25b   : > { %1095 = vadd.xlane.f32.xlu0 %v1094_v45 }
 0x2e0   : > { %v1086_v50 = vpop.xlane.xlu1 %1085  ;;  %v1081_v51 = vpop.xlane.xlu0 %1080 }
 0x2e1   : > { %v1098_v52 = vadd.f32 %v1086_v50, %v1074_v46  ;;  %v1097_v54 = vadd.f32 %v1081_v51, %v1073_v47 }
 0x2e3   : > { %1103 = vst.msk [vmem:[%s1689_s9 + $0x8] sm:$0xff] %vm370_vm1, %v1098_v52  ;;  %1102 = vst.msk [vmem:[%s1689_s9] sm:$0xff] %vm370_vm1, %v1097_v54 }
 0x2e4   : > { %v1091_v56 = vpop.xlane.xlu0 %1090 }
 0x2e5   : > { %v1099_v59 = vadd.f32 %v1091_v56, %v1075_v55 }
 0x2e7   : > { %1104 = vst.msk [vmem:[%s1689_s9 + $0x10] sm:$0xff] %vm370_vm1, %v1099_v59 }
 0x2e8   : > { %v1096_v12 = vpop.xlane.xlu0 %1095 }
 0x2e9   : > { %v1100_v44 = vadd.f32 %v1096_v12, %v1076_v7 }
 0x2eb   : > { %1105 = vst.msk [vmem:[%s1689_s9 + $0x18] sm:$0xff] %vm370_vm1, %v1100_v44 }
 0x31f   : > { %v1050_v1 = vpop.f32.mrb[12].mxu1 }
 0x320   : > { %v1052_v11 = vpop.f32.mrb[13].mxu1 }
 0x321   : > { %v1053_v48 = vpop.f32.mrb[14].mxu1 }
 0x322   : > { %v1055_v25 = vpop.f32.mrb[15].mxu1 }
 0x323   : > { %v1001_v29 = vpop.f32.mrb[12].mxu0 }
 0x324   : > { %v1051_v57 = vadd.f32 %v1050_v1, %v1001_v29  ;;  %v1003_v58 = vpop.f32.mrb[13].mxu0 }
 0x325   : > { %v1004_v60 = vpop.f32.mrb[14].mxu0 }
 0x326   : > { %v1065_v2 = vadd.f32 %v1051_v57, %v955_v49  ;;  %v1054_v62 = vadd.f32 %v1053_v48, %v1004_v60  ;;  %v1006_v13 = vpop.f32.mrb[15].mxu0 }
 0x327   : > { %v1058_v19 = vpop.f32.mrb[16].mxu1 }
 0x328   : > { %1069 = vst.msk [vmem:[%s1820_s12] sm:$0xff] %vm365_vm0, %v1065_v2  ;;  %v1066_v63 = vadd.f32 %v1054_v62, %v956_v61  ;;  %v1060_v3 = vpop.f32.mrb[17].mxu1 }
 0x329   : > { %v1061_v40 = vpop.f32.mrb[18].mxu1 }
 0x32a   : > { %1070 = vst.msk [vmem:[%s1820_s12 + $0x8] sm:$0xff] %vm365_vm0, %v1066_v63  ;;  %v1063_v8 = vpop.f32.mrb[19].mxu1 }
 0x32b   : > { %v1009_v0 = vpop.f32.mrb[16].mxu0 }
 0x32c   : > { %v1059_v14 = vadd.f32 %v1058_v19, %v1009_v0  ;;  %v1011_v33 = vpop.f32.mrb[17].mxu0 }
 0x32d   : > { %v1012_v6 = vpop.f32.mrb[18].mxu0 }
 0x32e   : > { %v1067_v53 = vadd.f32 %v1059_v14, %v957_v9  ;;  %v1062_v18 = vadd.f32 %v1061_v40, %v1012_v6  ;;  %v1014_v35 = vpop.f32.mrb[19].mxu0 }
 0x330   : > { %1071 = vst.msk [vmem:[%s1820_s12 + $0x10] sm:$0xff] %vm365_vm0, %v1067_v53  ;;  %v1068_v20 = vadd.f32 %v1062_v18, %v958_v15 }
 0x332   : > { %1072 = vst.msk [vmem:[%s1820_s12 + $0x18] sm:$0xff] %vm365_vm0, %v1068_v20 }
 0x333 PF: > { %s21_s29 = sadd.s32 1, %s1478_s29   ;;  %s1887_s24 = smov %s1462_s25 }
 0x334   : > { %p18_p9 = scmp.ge.s32.totalorder %s21_s29, 4   ;;  %s1888_s25 = smov %s1466_s26 }
 0x335   : > { %s1889_s26 = smov %s1574_s13  ;;  %s1890_s27 = smov %s1474_s28 }
 0x336   : > { %s1891_s28 = smov %s1893_s8  ;;  %20 = sbr.rel (!%p18_p9) target bundleno = 4 (0x4), region = 100 }
 0x33d   :  { %1159 = vsyncpa [#allocation3], 1 }
 0x33e   :  { %1161 = vsyncpa [#allocation3 + $0x1], 1 }

</bundles_post_ra>
